<compile_context>
chip_gen: v7x
topology: tpu7x:2x2x1
jax: 0.10.0
libtpu: 0.0.40
codegen_flags: <defaults>
</compile_context>

<pallas_src>
import jax
import jax.numpy as jnp
from jax import lax
from jax.experimental import pallas as pl
from jax.experimental.pallas import tpu as pltpu


_NUM_OUTER = 2   # outer parallel grid axis; matches v7x's 2 TCs, harmless on 1-TC chips
_SUBLANE = 8
_LANE = 128


def fasttext_sentvec_kernel(ids_ref, emb_hbm, out_ref, rows_ref, sems):
    """One inner grid step = one sentence.

    ids_ref : SMEM int32[B, S]    (scalar-prefetch)
    emb_hbm : HBM  f32[V, Dp]     (memory_space=pl.ANY; never fully loaded)
    out_ref : VMEM f32[B/NC, Dp]  (one output block per outer grid index)
    rows_ref: VMEM f32[2, S, Dp]  (double-buffered gather landing buffer)
    sems    : DMA semaphores (2, S)
    """
    o = pl.program_id(0)
    i = pl.program_id(1)
    n_inner = pl.num_programs(1)
    S = ids_ref.shape[1]

    sent = o * n_inner + i
    slot = lax.rem(i, 2)

    def gather_rows(sent_idx, dst_slot):
        # Issue all S row gathers of one sentence concurrently: each row is
        # only Dp*4 bytes, so per-DMA latency dominates and overlapping them
        # collapses S round trips into roughly one.
        for t in range(S):
            pltpu.make_async_copy(
                emb_hbm.at[pl.ds(ids_ref[sent_idx, t], 1), :],
                rows_ref.at[dst_slot, pl.ds(t, 1), :],
                sems.at[dst_slot, t],
            ).start()

    # Prime the pipeline on the first inner step.  Only the outer ("parallel")
    # axis is sharded across TensorCores, so every core executes i == 0.
    @pl.when(i == 0)
    def _():
        gather_rows(sent, slot)

    # Prefetch the next sentence's rows into the other slot; that DMA latency
    # is hidden behind this sentence's compute.
    @pl.when(i + 1 < n_inner)
    def _():
        gather_rows(sent + 1, 1 - slot)

    # Wait for the current slot.  Placeholder source index: the wait only
    # needs the transfer shape, not a fresh SMEM read of the token id.
    for t in range(S):
        pltpu.make_async_copy(
            emb_hbm.at[pl.ds(0, 1), :],
            rows_ref.at[slot, pl.ds(t, 1), :],
            sems.at[slot, t],
        ).wait()

    # Vectorized normalize + sum over all S rows of this sentence.
    v = rows_ref[slot].astype(jnp.float32)                         # (S, Dp)
    sumsq = jnp.sum(v * v, axis=-1, keepdims=True)                 # (S, 1)  XLU
    nz = sumsq > 0.0
    inv = jnp.where(nz, lax.rsqrt(sumsq), 0.0)                     # (S, 1)  EUP
    # NOTE: for long sentences (S >= ~128) this sublane reduce should become a
    # (1, S) x (S, Dp) MXU matmul; at S = 8 the reduce is cheaper.
    sent_vec = jnp.sum(v * inv, axis=0, keepdims=True)             # (1, Dp) XLU
    cnt = jnp.sum(nz.astype(jnp.float32), axis=0, keepdims=True)   # (1, 1)
    denom = jnp.where(cnt > 0.0, cnt, 1.0)
    out_ref[pl.ds(i, 1), :] = sent_vec / denom


def prepare_fasttext_table(emb):
    """Pad the embedding dim to a lane multiple ONCE at model-load time.

    Never call this per batch: for a real fasttext table (V in the millions,
    D = 300) the pad materializes an O(V*Dp) copy of the table.
    """
    _, D = emb.shape
    Dp = ((D + _LANE - 1) // _LANE) * _LANE
    if Dp != D:
        emb = jnp.pad(emb, ((0, 0), (0, Dp - D)))   # zero pad keeps row norms
    return emb, D


def fasttext_sentence_vectors(token_ids, emb_padded, dim):
    """token_ids: int[B, S], emb_padded: float32[V, Dp] -> float32[B, dim]."""
    V, Dp = emb_padded.shape
    B, S = token_ids.shape

    # Clamp ids: the in-kernel DMA gather has no bounds checking on TPU.
    ids = jnp.clip(token_ids.astype(jnp.int32), 0, V - 1)

    # Pad the batch so each outer-grid chunk is a sublane multiple (unmasked
    # lane-dense output stores) and splits evenly across the outer axis.
    align = _NUM_OUTER * _SUBLANE
    Bp = ((B + align - 1) // align) * align
    if Bp != B:
        ids = jnp.pad(ids, ((0, Bp - B), (0, 0)))
    inner = Bp // _NUM_OUTER

    out = pl.pallas_call(
        fasttext_sentvec_kernel,
        out_shape=jax.ShapeDtypeStruct((Bp, Dp), jnp.float32),
        grid_spec=pltpu.PrefetchScalarGridSpec(
            num_scalar_prefetch=1,
            grid=(_NUM_OUTER, inner),
            in_specs=[pl.BlockSpec(memory_space=pl.ANY)],   # table stays in HBM
            out_specs=pl.BlockSpec((inner, Dp), lambda o, i, ids: (o, 0)),
            scratch_shapes=[
                # 2 * S * Dp * 4 bytes -- tiny even against v7x's 64 MiB VMEM.
                pltpu.VMEM((2, S, Dp), jnp.float32),
                pltpu.SemaphoreType.DMA((2, S)),
            ],
        ),
        compiler_params=pltpu.CompilerParams(
            dimension_semantics=("parallel", "arbitrary")),
    )(ids, emb_padded)
    return out[:B, :dim]


def _reference(token_ids, emb):
    v = emb[token_ids]                                        # (B, S, D)
    norm = jnp.sqrt(jnp.sum(v * v, axis=-1, keepdims=True))   # (B, S, 1)
    nz = norm > 0.0
    vn = jnp.where(nz, v / jnp.where(nz, norm, 1.0), 0.0)
    cnt = jnp.sum(nz.astype(jnp.float32), axis=1)             # (B, 1)
    return jnp.sum(vn, axis=1) / jnp.where(cnt > 0, cnt, 1.0)


if __name__ == "__main__":
    # Deterministic synthetic "fasttext model": vocab V=512, dim D=128,
    # batch of B=16 sentences with S=8 tokens each. (No files are read.)
    key = jax.random.PRNGKey(0)
    k_emb, k_ids = jax.random.split(key)
    V, D, B, S = 512, 128, 16, 8
    emb = jax.random.normal(k_emb, (V, D), dtype=jnp.float32) * 0.1
    emb = emb.at[0].set(0.0)               # zero-norm row to exercise the mask
    token_ids = jax.random.randint(k_ids, (B, S), 0, V, dtype=jnp.int32)
    token_ids = token_ids.at[0, 3].set(0)  # include the zero-norm token

    # Pad the table once ("model load" time), not per call.
    emb_p, dim = prepare_fasttext_table(emb)

    sent_vecs = fasttext_sentence_vectors(token_ids, emb_p, dim)
    sent_vecs = jax.block_until_ready(sent_vecs)

    ref = _reference(token_ids, emb)
    assert sent_vecs.shape == (B, D) and sent_vecs.dtype == jnp.float32
    assert jnp.allclose(sent_vecs, ref, atol=1e-4, rtol=1e-4), float(
        jnp.max(jnp.abs(sent_vecs - ref)))

    print("KERNEL_OK")
</pallas_src>

<mosaic_0001>
module attributes {stable_mosaic.version = 11 : i64} {
  func.func @fasttext_sentvec_kernel(%arg0: i32, %arg1: i32, %arg2: memref<16x8xi32, #tpu.memory_space<smem>>, %arg3: memref<512x128xf32, #tpu.memory_space<any>>, %arg4: memref<8x128xf32, #tpu.memory_space<vmem>>, %arg5: memref<2x8x128xf32, #tpu.memory_space<vmem>>, %arg6: memref<2x8x!tpu.dma_semaphore, #tpu.memory_space<semaphore_mem>>) attributes {dimension_semantics = [#tpu.dimension_semantics<parallel>, #tpu.dimension_semantics<arbitrary>], iteration_bounds = array<i64: 2, 8>, scalar_prefetch = 1 : i64, scratch_operands = 2 : i64, tpu.core_type = #tpu.core_type<tc>, window_params = [{}, {transform_indices = @transform_1, window_bounds = array<i64: 8, 128>}]} {
    %c8_i32 = arith.constant 8 : i32
    %0 = arith.muli %arg0, %c8_i32 : i32
    %1 = arith.addi %0, %arg1 : i32
    %c2_i32 = arith.constant 2 : i32
    %2 = arith.remsi %arg1, %c2_i32 : i32
    %c0_i32 = arith.constant 0 : i32
    %3 = arith.cmpi eq, %arg1, %c0_i32 : i32
    %4 = arith.extui %3 : i1 to i32
    %c0_i32_0 = arith.constant 0 : i32
    %5 = arith.cmpi ne, %4, %c0_i32_0 : i32
    scf.if %5 {
      %77 = arith.index_cast %1 : i32 to index
      %c0_46 = arith.constant 0 : index
      %78 = memref.load %arg2[%77, %c0_46] : memref<16x8xi32, #tpu.memory_space<smem>>
      %c0_i32_47 = arith.constant 0 : i32
      %c0_i32_48 = arith.constant 0 : i32
      %79 = tpu.memref_slice %arg3[%78, %c0_i32_48] : memref<512x128xf32, #tpu.memory_space<any>> -> memref<1x128xf32, #tpu.memory_space<any>>
      %c0_i32_49 = arith.constant 0 : i32
      %c0_i32_50 = arith.constant 0 : i32
      %80 = tpu.memref_slice %arg5[%2, %c0_i32_49, %c0_i32_50] : memref<2x8x128xf32, #tpu.memory_space<vmem>> -> memref<1x1x128xf32, #tpu.memory_space<vmem>>
      %81 = tpu.memref_squeeze %80 : memref<1x1x128xf32, #tpu.memory_space<vmem>> -> memref<1x128xf32, #tpu.memory_space<vmem>>
      %82 = tpu.memref_slice %arg6[%2, %c0_i32_47] : memref<2x8x!tpu.dma_semaphore, #tpu.memory_space<semaphore_mem>> -> memref<1x1x!tpu.dma_semaphore, #tpu.memory_space<semaphore_mem>>
      %83 = tpu.memref_squeeze %82 : memref<1x1x!tpu.dma_semaphore, #tpu.memory_space<semaphore_mem>> -> memref<!tpu.dma_semaphore, #tpu.memory_space<semaphore_mem>>
      tpu.enqueue_dma source(%79 : memref<1x128xf32, #tpu.memory_space<any>>) target(%81 : memref<1x128xf32, #tpu.memory_space<vmem>>) target_semaphore(%83 : memref<!tpu.dma_semaphore, #tpu.memory_space<semaphore_mem>>)
      %84 = arith.index_cast %1 : i32 to index
      %c1 = arith.constant 1 : index
      %85 = memref.load %arg2[%84, %c1] : memref<16x8xi32, #tpu.memory_space<smem>>
      %c1_i32_51 = arith.constant 1 : i32
      %c0_i32_52 = arith.constant 0 : i32
      %86 = tpu.memref_slice %arg3[%85, %c0_i32_52] : memref<512x128xf32, #tpu.memory_space<any>> -> memref<1x128xf32, #tpu.memory_space<any>>
      %c1_i32_53 = arith.constant 1 : i32
      %c0_i32_54 = arith.constant 0 : i32
      %87 = tpu.memref_slice %arg5[%2, %c1_i32_53, %c0_i32_54] : memref<2x8x128xf32, #tpu.memory_space<vmem>> -> memref<1x1x128xf32, #tpu.memory_space<vmem>>
      %88 = tpu.memref_squeeze %87 : memref<1x1x128xf32, #tpu.memory_space<vmem>> -> memref<1x128xf32, #tpu.memory_space<vmem>>
      %89 = tpu.memref_slice %arg6[%2, %c1_i32_51] : memref<2x8x!tpu.dma_semaphore, #tpu.memory_space<semaphore_mem>> -> memref<1x1x!tpu.dma_semaphore, #tpu.memory_space<semaphore_mem>>
      %90 = tpu.memref_squeeze %89 : memref<1x1x!tpu.dma_semaphore, #tpu.memory_space<semaphore_mem>> -> memref<!tpu.dma_semaphore, #tpu.memory_space<semaphore_mem>>
      tpu.enqueue_dma source(%86 : memref<1x128xf32, #tpu.memory_space<any>>) target(%88 : memref<1x128xf32, #tpu.memory_space<vmem>>) target_semaphore(%90 : memref<!tpu.dma_semaphore, #tpu.memory_space<semaphore_mem>>)
      %91 = arith.index_cast %1 : i32 to index
      %c2 = arith.constant 2 : index
      %92 = memref.load %arg2[%91, %c2] : memref<16x8xi32, #tpu.memory_space<smem>>
      %c2_i32_55 = arith.constant 2 : i32
      %c0_i32_56 = arith.constant 0 : i32
      %93 = tpu.memref_slice %arg3[%92, %c0_i32_56] : memref<512x128xf32, #tpu.memory_space<any>> -> memref<1x128xf32, #tpu.memory_space<any>>
      %c2_i32_57 = arith.constant 2 : i32
      %c0_i32_58 = arith.constant 0 : i32
      %94 = tpu.memref_slice %arg5[%2, %c2_i32_57, %c0_i32_58] : memref<2x8x128xf32, #tpu.memory_space<vmem>> -> memref<1x1x128xf32, #tpu.memory_space<vmem>>
      %95 = tpu.memref_squeeze %94 : memref<1x1x128xf32, #tpu.memory_space<vmem>> -> memref<1x128xf32, #tpu.memory_space<vmem>>
      %96 = tpu.memref_slice %arg6[%2, %c2_i32_55] : memref<2x8x!tpu.dma_semaphore, #tpu.memory_space<semaphore_mem>> -> memref<1x1x!tpu.dma_semaphore, #tpu.memory_space<semaphore_mem>>
      %97 = tpu.memref_squeeze %96 : memref<1x1x!tpu.dma_semaphore, #tpu.memory_space<semaphore_mem>> -> memref<!tpu.dma_semaphore, #tpu.memory_space<semaphore_mem>>
      tpu.enqueue_dma source(%93 : memref<1x128xf32, #tpu.memory_space<any>>) target(%95 : memref<1x128xf32, #tpu.memory_space<vmem>>) target_semaphore(%97 : memref<!tpu.dma_semaphore, #tpu.memory_space<semaphore_mem>>)
      %98 = arith.index_cast %1 : i32 to index
      %c3 = arith.constant 3 : index
      %99 = memref.load %arg2[%98, %c3] : memref<16x8xi32, #tpu.memory_space<smem>>
      %c3_i32_59 = arith.constant 3 : i32
      %c0_i32_60 = arith.constant 0 : i32
      %100 = tpu.memref_slice %arg3[%99, %c0_i32_60] : memref<512x128xf32, #tpu.memory_space<any>> -> memref<1x128xf32, #tpu.memory_space<any>>
      %c3_i32_61 = arith.constant 3 : i32
      %c0_i32_62 = arith.constant 0 : i32
      %101 = tpu.memref_slice %arg5[%2, %c3_i32_61, %c0_i32_62] : memref<2x8x128xf32, #tpu.memory_space<vmem>> -> memref<1x1x128xf32, #tpu.memory_space<vmem>>
      %102 = tpu.memref_squeeze %101 : memref<1x1x128xf32, #tpu.memory_space<vmem>> -> memref<1x128xf32, #tpu.memory_space<vmem>>
      %103 = tpu.memref_slice %arg6[%2, %c3_i32_59] : memref<2x8x!tpu.dma_semaphore, #tpu.memory_space<semaphore_mem>> -> memref<1x1x!tpu.dma_semaphore, #tpu.memory_space<semaphore_mem>>
      %104 = tpu.memref_squeeze %103 : memref<1x1x!tpu.dma_semaphore, #tpu.memory_space<semaphore_mem>> -> memref<!tpu.dma_semaphore, #tpu.memory_space<semaphore_mem>>
      tpu.enqueue_dma source(%100 : memref<1x128xf32, #tpu.memory_space<any>>) target(%102 : memref<1x128xf32, #tpu.memory_space<vmem>>) target_semaphore(%104 : memref<!tpu.dma_semaphore, #tpu.memory_space<semaphore_mem>>)
      %105 = arith.index_cast %1 : i32 to index
      %c4 = arith.constant 4 : index
      %106 = memref.load %arg2[%105, %c4] : memref<16x8xi32, #tpu.memory_space<smem>>
      %c4_i32_63 = arith.constant 4 : i32
      %c0_i32_64 = arith.constant 0 : i32
      %107 = tpu.memref_slice %arg3[%106, %c0_i32_64] : memref<512x128xf32, #tpu.memory_space<any>> -> memref<1x128xf32, #tpu.memory_space<any>>
      %c4_i32_65 = arith.constant 4 : i32
      %c0_i32_66 = arith.constant 0 : i32
      %108 = tpu.memref_slice %arg5[%2, %c4_i32_65, %c0_i32_66] : memref<2x8x128xf32, #tpu.memory_space<vmem>> -> memref<1x1x128xf32, #tpu.memory_space<vmem>>
      %109 = tpu.memref_squeeze %108 : memref<1x1x128xf32, #tpu.memory_space<vmem>> -> memref<1x128xf32, #tpu.memory_space<vmem>>
      %110 = tpu.memref_slice %arg6[%2, %c4_i32_63] : memref<2x8x!tpu.dma_semaphore, #tpu.memory_space<semaphore_mem>> -> memref<1x1x!tpu.dma_semaphore, #tpu.memory_space<semaphore_mem>>
      %111 = tpu.memref_squeeze %110 : memref<1x1x!tpu.dma_semaphore, #tpu.memory_space<semaphore_mem>> -> memref<!tpu.dma_semaphore, #tpu.memory_space<semaphore_mem>>
      tpu.enqueue_dma source(%107 : memref<1x128xf32, #tpu.memory_space<any>>) target(%109 : memref<1x128xf32, #tpu.memory_space<vmem>>) target_semaphore(%111 : memref<!tpu.dma_semaphore, #tpu.memory_space<semaphore_mem>>)
      %112 = arith.index_cast %1 : i32 to index
      %c5 = arith.constant 5 : index
      %113 = memref.load %arg2[%112, %c5] : memref<16x8xi32, #tpu.memory_space<smem>>
      %c5_i32_67 = arith.constant 5 : i32
      %c0_i32_68 = arith.constant 0 : i32
      %114 = tpu.memref_slice %arg3[%113, %c0_i32_68] : memref<512x128xf32, #tpu.memory_space<any>> -> memref<1x128xf32, #tpu.memory_space<any>>
      %c5_i32_69 = arith.constant 5 : i32
      %c0_i32_70 = arith.constant 0 : i32
      %115 = tpu.memref_slice %arg5[%2, %c5_i32_69, %c0_i32_70] : memref<2x8x128xf32, #tpu.memory_space<vmem>> -> memref<1x1x128xf32, #tpu.memory_space<vmem>>
      %116 = tpu.memref_squeeze %115 : memref<1x1x128xf32, #tpu.memory_space<vmem>> -> memref<1x128xf32, #tpu.memory_space<vmem>>
      %117 = tpu.memref_slice %arg6[%2, %c5_i32_67] : memref<2x8x!tpu.dma_semaphore, #tpu.memory_space<semaphore_mem>> -> memref<1x1x!tpu.dma_semaphore, #tpu.memory_space<semaphore_mem>>
      %118 = tpu.memref_squeeze %117 : memref<1x1x!tpu.dma_semaphore, #tpu.memory_space<semaphore_mem>> -> memref<!tpu.dma_semaphore, #tpu.memory_space<semaphore_mem>>
      tpu.enqueue_dma source(%114 : memref<1x128xf32, #tpu.memory_space<any>>) target(%116 : memref<1x128xf32, #tpu.memory_space<vmem>>) target_semaphore(%118 : memref<!tpu.dma_semaphore, #tpu.memory_space<semaphore_mem>>)
      %119 = arith.index_cast %1 : i32 to index
      %c6 = arith.constant 6 : index
      %120 = memref.load %arg2[%119, %c6] : memref<16x8xi32, #tpu.memory_space<smem>>
      %c6_i32_71 = arith.constant 6 : i32
      %c0_i32_72 = arith.constant 0 : i32
      %121 = tpu.memref_slice %arg3[%120, %c0_i32_72] : memref<512x128xf32, #tpu.memory_space<any>> -> memref<1x128xf32, #tpu.memory_space<any>>
      %c6_i32_73 = arith.constant 6 : i32
      %c0_i32_74 = arith.constant 0 : i32
      %122 = tpu.memref_slice %arg5[%2, %c6_i32_73, %c0_i32_74] : memref<2x8x128xf32, #tpu.memory_space<vmem>> -> memref<1x1x128xf32, #tpu.memory_space<vmem>>
      %123 = tpu.memref_squeeze %122 : memref<1x1x128xf32, #tpu.memory_space<vmem>> -> memref<1x128xf32, #tpu.memory_space<vmem>>
      %124 = tpu.memref_slice %arg6[%2, %c6_i32_71] : memref<2x8x!tpu.dma_semaphore, #tpu.memory_space<semaphore_mem>> -> memref<1x1x!tpu.dma_semaphore, #tpu.memory_space<semaphore_mem>>
      %125 = tpu.memref_squeeze %124 : memref<1x1x!tpu.dma_semaphore, #tpu.memory_space<semaphore_mem>> -> memref<!tpu.dma_semaphore, #tpu.memory_space<semaphore_mem>>
      tpu.enqueue_dma source(%121 : memref<1x128xf32, #tpu.memory_space<any>>) target(%123 : memref<1x128xf32, #tpu.memory_space<vmem>>) target_semaphore(%125 : memref<!tpu.dma_semaphore, #tpu.memory_space<semaphore_mem>>)
      %126 = arith.index_cast %1 : i32 to index
      %c7 = arith.constant 7 : index
      %127 = memref.load %arg2[%126, %c7] : memref<16x8xi32, #tpu.memory_space<smem>>
      %c7_i32_75 = arith.constant 7 : i32
      %c0_i32_76 = arith.constant 0 : i32
      %128 = tpu.memref_slice %arg3[%127, %c0_i32_76] : memref<512x128xf32, #tpu.memory_space<any>> -> memref<1x128xf32, #tpu.memory_space<any>>
      %c7_i32_77 = arith.constant 7 : i32
      %c0_i32_78 = arith.constant 0 : i32
      %129 = tpu.memref_slice %arg5[%2, %c7_i32_77, %c0_i32_78] : memref<2x8x128xf32, #tpu.memory_space<vmem>> -> memref<1x1x128xf32, #tpu.memory_space<vmem>>
      %130 = tpu.memref_squeeze %129 : memref<1x1x128xf32, #tpu.memory_space<vmem>> -> memref<1x128xf32, #tpu.memory_space<vmem>>
      %131 = tpu.memref_slice %arg6[%2, %c7_i32_75] : memref<2x8x!tpu.dma_semaphore, #tpu.memory_space<semaphore_mem>> -> memref<1x1x!tpu.dma_semaphore, #tpu.memory_space<semaphore_mem>>
      %132 = tpu.memref_squeeze %131 : memref<1x1x!tpu.dma_semaphore, #tpu.memory_space<semaphore_mem>> -> memref<!tpu.dma_semaphore, #tpu.memory_space<semaphore_mem>>
      tpu.enqueue_dma source(%128 : memref<1x128xf32, #tpu.memory_space<any>>) target(%130 : memref<1x128xf32, #tpu.memory_space<vmem>>) target_semaphore(%132 : memref<!tpu.dma_semaphore, #tpu.memory_space<semaphore_mem>>)
    } else {
    }
    %c1_i32 = arith.constant 1 : i32
    %6 = arith.addi %arg1, %c1_i32 : i32
    %c8_i32_1 = arith.constant 8 : i32
    %7 = arith.cmpi slt, %6, %c8_i32_1 : i32
    %8 = arith.extui %7 : i1 to i32
    %c0_i32_2 = arith.constant 0 : i32
    %9 = arith.cmpi ne, %8, %c0_i32_2 : i32
    scf.if %9 {
      %c1_i32_46 = arith.constant 1 : i32
      %77 = arith.addi %1, %c1_i32_46 : i32
      %c1_i32_47 = arith.constant 1 : i32
      %78 = arith.subi %c1_i32_47, %2 : i32
      %79 = arith.index_cast %77 : i32 to index
      %c0_48 = arith.constant 0 : index
      %80 = memref.load %arg2[%79, %c0_48] : memref<16x8xi32, #tpu.memory_space<smem>>
      %c0_i32_49 = arith.constant 0 : i32
      %c0_i32_50 = arith.constant 0 : i32
      %81 = tpu.memref_slice %arg3[%80, %c0_i32_50] : memref<512x128xf32, #tpu.memory_space<any>> -> memref<1x128xf32, #tpu.memory_space<any>>
      %c0_i32_51 = arith.constant 0 : i32
      %c0_i32_52 = arith.constant 0 : i32
      %82 = tpu.memref_slice %arg5[%78, %c0_i32_51, %c0_i32_52] : memref<2x8x128xf32, #tpu.memory_space<vmem>> -> memref<1x1x128xf32, #tpu.memory_space<vmem>>
      %83 = tpu.memref_squeeze %82 : memref<1x1x128xf32, #tpu.memory_space<vmem>> -> memref<1x128xf32, #tpu.memory_space<vmem>>
      %84 = tpu.memref_slice %arg6[%78, %c0_i32_49] : memref<2x8x!tpu.dma_semaphore, #tpu.memory_space<semaphore_mem>> -> memref<1x1x!tpu.dma_semaphore, #tpu.memory_space<semaphore_mem>>
      %85 = tpu.memref_squeeze %84 : memref<1x1x!tpu.dma_semaphore, #tpu.memory_space<semaphore_mem>> -> memref<!tpu.dma_semaphore, #tpu.memory_space<semaphore_mem>>
      tpu.enqueue_dma source(%81 : memref<1x128xf32, #tpu.memory_space<any>>) target(%83 : memref<1x128xf32, #tpu.memory_space<vmem>>) target_semaphore(%85 : memref<!tpu.dma_semaphore, #tpu.memory_space<semaphore_mem>>)
      %86 = arith.index_cast %77 : i32 to index
      %c1 = arith.constant 1 : index
      %87 = memref.load %arg2[%86, %c1] : memref<16x8xi32, #tpu.memory_space<smem>>
      %c1_i32_53 = arith.constant 1 : i32
      %c0_i32_54 = arith.constant 0 : i32
      %88 = tpu.memref_slice %arg3[%87, %c0_i32_54] : memref<512x128xf32, #tpu.memory_space<any>> -> memref<1x128xf32, #tpu.memory_space<any>>
      %c1_i32_55 = arith.constant 1 : i32
      %c0_i32_56 = arith.constant 0 : i32
      %89 = tpu.memref_slice %arg5[%78, %c1_i32_55, %c0_i32_56] : memref<2x8x128xf32, #tpu.memory_space<vmem>> -> memref<1x1x128xf32, #tpu.memory_space<vmem>>
      %90 = tpu.memref_squeeze %89 : memref<1x1x128xf32, #tpu.memory_space<vmem>> -> memref<1x128xf32, #tpu.memory_space<vmem>>
      %91 = tpu.memref_slice %arg6[%78, %c1_i32_53] : memref<2x8x!tpu.dma_semaphore, #tpu.memory_space<semaphore_mem>> -> memref<1x1x!tpu.dma_semaphore, #tpu.memory_space<semaphore_mem>>
      %92 = tpu.memref_squeeze %91 : memref<1x1x!tpu.dma_semaphore, #tpu.memory_space<semaphore_mem>> -> memref<!tpu.dma_semaphore, #tpu.memory_space<semaphore_mem>>
      tpu.enqueue_dma source(%88 : memref<1x128xf32, #tpu.memory_space<any>>) target(%90 : memref<1x128xf32, #tpu.memory_space<vmem>>) target_semaphore(%92 : memref<!tpu.dma_semaphore, #tpu.memory_space<semaphore_mem>>)
      %93 = arith.index_cast %77 : i32 to index
      %c2 = arith.constant 2 : index
      %94 = memref.load %arg2[%93, %c2] : memref<16x8xi32, #tpu.memory_space<smem>>
      %c2_i32_57 = arith.constant 2 : i32
      %c0_i32_58 = arith.constant 0 : i32
      %95 = tpu.memref_slice %arg3[%94, %c0_i32_58] : memref<512x128xf32, #tpu.memory_space<any>> -> memref<1x128xf32, #tpu.memory_space<any>>
      %c2_i32_59 = arith.constant 2 : i32
      %c0_i32_60 = arith.constant 0 : i32
      %96 = tpu.memref_slice %arg5[%78, %c2_i32_59, %c0_i32_60] : memref<2x8x128xf32, #tpu.memory_space<vmem>> -> memref<1x1x128xf32, #tpu.memory_space<vmem>>
      %97 = tpu.memref_squeeze %96 : memref<1x1x128xf32, #tpu.memory_space<vmem>> -> memref<1x128xf32, #tpu.memory_space<vmem>>
      %98 = tpu.memref_slice %arg6[%78, %c2_i32_57] : memref<2x8x!tpu.dma_semaphore, #tpu.memory_space<semaphore_mem>> -> memref<1x1x!tpu.dma_semaphore, #tpu.memory_space<semaphore_mem>>
      %99 = tpu.memref_squeeze %98 : memref<1x1x!tpu.dma_semaphore, #tpu.memory_space<semaphore_mem>> -> memref<!tpu.dma_semaphore, #tpu.memory_space<semaphore_mem>>
      tpu.enqueue_dma source(%95 : memref<1x128xf32, #tpu.memory_space<any>>) target(%97 : memref<1x128xf32, #tpu.memory_space<vmem>>) target_semaphore(%99 : memref<!tpu.dma_semaphore, #tpu.memory_space<semaphore_mem>>)
      %100 = arith.index_cast %77 : i32 to index
      %c3 = arith.constant 3 : index
      %101 = memref.load %arg2[%100, %c3] : memref<16x8xi32, #tpu.memory_space<smem>>
      %c3_i32_61 = arith.constant 3 : i32
      %c0_i32_62 = arith.constant 0 : i32
      %102 = tpu.memref_slice %arg3[%101, %c0_i32_62] : memref<512x128xf32, #tpu.memory_space<any>> -> memref<1x128xf32, #tpu.memory_space<any>>
      %c3_i32_63 = arith.constant 3 : i32
      %c0_i32_64 = arith.constant 0 : i32
      %103 = tpu.memref_slice %arg5[%78, %c3_i32_63, %c0_i32_64] : memref<2x8x128xf32, #tpu.memory_space<vmem>> -> memref<1x1x128xf32, #tpu.memory_space<vmem>>
      %104 = tpu.memref_squeeze %103 : memref<1x1x128xf32, #tpu.memory_space<vmem>> -> memref<1x128xf32, #tpu.memory_space<vmem>>
      %105 = tpu.memref_slice %arg6[%78, %c3_i32_61] : memref<2x8x!tpu.dma_semaphore, #tpu.memory_space<semaphore_mem>> -> memref<1x1x!tpu.dma_semaphore, #tpu.memory_space<semaphore_mem>>
      %106 = tpu.memref_squeeze %105 : memref<1x1x!tpu.dma_semaphore, #tpu.memory_space<semaphore_mem>> -> memref<!tpu.dma_semaphore, #tpu.memory_space<semaphore_mem>>
      tpu.enqueue_dma source(%102 : memref<1x128xf32, #tpu.memory_space<any>>) target(%104 : memref<1x128xf32, #tpu.memory_space<vmem>>) target_semaphore(%106 : memref<!tpu.dma_semaphore, #tpu.memory_space<semaphore_mem>>)
      %107 = arith.index_cast %77 : i32 to index
      %c4 = arith.constant 4 : index
      %108 = memref.load %arg2[%107, %c4] : memref<16x8xi32, #tpu.memory_space<smem>>
      %c4_i32_65 = arith.constant 4 : i32
      %c0_i32_66 = arith.constant 0 : i32
      %109 = tpu.memref_slice %arg3[%108, %c0_i32_66] : memref<512x128xf32, #tpu.memory_space<any>> -> memref<1x128xf32, #tpu.memory_space<any>>
      %c4_i32_67 = arith.constant 4 : i32
      %c0_i32_68 = arith.constant 0 : i32
      %110 = tpu.memref_slice %arg5[%78, %c4_i32_67, %c0_i32_68] : memref<2x8x128xf32, #tpu.memory_space<vmem>> -> memref<1x1x128xf32, #tpu.memory_space<vmem>>
      %111 = tpu.memref_squeeze %110 : memref<1x1x128xf32, #tpu.memory_space<vmem>> -> memref<1x128xf32, #tpu.memory_space<vmem>>
      %112 = tpu.memref_slice %arg6[%78, %c4_i32_65] : memref<2x8x!tpu.dma_semaphore, #tpu.memory_space<semaphore_mem>> -> memref<1x1x!tpu.dma_semaphore, #tpu.memory_space<semaphore_mem>>
      %113 = tpu.memref_squeeze %112 : memref<1x1x!tpu.dma_semaphore, #tpu.memory_space<semaphore_mem>> -> memref<!tpu.dma_semaphore, #tpu.memory_space<semaphore_mem>>
      tpu.enqueue_dma source(%109 : memref<1x128xf32, #tpu.memory_space<any>>) target(%111 : memref<1x128xf32, #tpu.memory_space<vmem>>) target_semaphore(%113 : memref<!tpu.dma_semaphore, #tpu.memory_space<semaphore_mem>>)
      %114 = arith.index_cast %77 : i32 to index
      %c5 = arith.constant 5 : index
      %115 = memref.load %arg2[%114, %c5] : memref<16x8xi32, #tpu.memory_space<smem>>
      %c5_i32_69 = arith.constant 5 : i32
      %c0_i32_70 = arith.constant 0 : i32
      %116 = tpu.memref_slice %arg3[%115, %c0_i32_70] : memref<512x128xf32, #tpu.memory_space<any>> -> memref<1x128xf32, #tpu.memory_space<any>>
      %c5_i32_71 = arith.constant 5 : i32
      %c0_i32_72 = arith.constant 0 : i32
      %117 = tpu.memref_slice %arg5[%78, %c5_i32_71, %c0_i32_72] : memref<2x8x128xf32, #tpu.memory_space<vmem>> -> memref<1x1x128xf32, #tpu.memory_space<vmem>>
      %118 = tpu.memref_squeeze %117 : memref<1x1x128xf32, #tpu.memory_space<vmem>> -> memref<1x128xf32, #tpu.memory_space<vmem>>
      %119 = tpu.memref_slice %arg6[%78, %c5_i32_69] : memref<2x8x!tpu.dma_semaphore, #tpu.memory_space<semaphore_mem>> -> memref<1x1x!tpu.dma_semaphore, #tpu.memory_space<semaphore_mem>>
      %120 = tpu.memref_squeeze %119 : memref<1x1x!tpu.dma_semaphore, #tpu.memory_space<semaphore_mem>> -> memref<!tpu.dma_semaphore, #tpu.memory_space<semaphore_mem>>
      tpu.enqueue_dma source(%116 : memref<1x128xf32, #tpu.memory_space<any>>) target(%118 : memref<1x128xf32, #tpu.memory_space<vmem>>) target_semaphore(%120 : memref<!tpu.dma_semaphore, #tpu.memory_space<semaphore_mem>>)
      %121 = arith.index_cast %77 : i32 to index
      %c6 = arith.constant 6 : index
      %122 = memref.load %arg2[%121, %c6] : memref<16x8xi32, #tpu.memory_space<smem>>
      %c6_i32_73 = arith.constant 6 : i32
      %c0_i32_74 = arith.constant 0 : i32
      %123 = tpu.memref_slice %arg3[%122, %c0_i32_74] : memref<512x128xf32, #tpu.memory_space<any>> -> memref<1x128xf32, #tpu.memory_space<any>>
      %c6_i32_75 = arith.constant 6 : i32
      %c0_i32_76 = arith.constant 0 : i32
      %124 = tpu.memref_slice %arg5[%78, %c6_i32_75, %c0_i32_76] : memref<2x8x128xf32, #tpu.memory_space<vmem>> -> memref<1x1x128xf32, #tpu.memory_space<vmem>>
      %125 = tpu.memref_squeeze %124 : memref<1x1x128xf32, #tpu.memory_space<vmem>> -> memref<1x128xf32, #tpu.memory_space<vmem>>
      %126 = tpu.memref_slice %arg6[%78, %c6_i32_73] : memref<2x8x!tpu.dma_semaphore, #tpu.memory_space<semaphore_mem>> -> memref<1x1x!tpu.dma_semaphore, #tpu.memory_space<semaphore_mem>>
      %127 = tpu.memref_squeeze %126 : memref<1x1x!tpu.dma_semaphore, #tpu.memory_space<semaphore_mem>> -> memref<!tpu.dma_semaphore, #tpu.memory_space<semaphore_mem>>
      tpu.enqueue_dma source(%123 : memref<1x128xf32, #tpu.memory_space<any>>) target(%125 : memref<1x128xf32, #tpu.memory_space<vmem>>) target_semaphore(%127 : memref<!tpu.dma_semaphore, #tpu.memory_space<semaphore_mem>>)
      %128 = arith.index_cast %77 : i32 to index
      %c7 = arith.constant 7 : index
      %129 = memref.load %arg2[%128, %c7] : memref<16x8xi32, #tpu.memory_space<smem>>
      %c7_i32_77 = arith.constant 7 : i32
      %c0_i32_78 = arith.constant 0 : i32
      %130 = tpu.memref_slice %arg3[%129, %c0_i32_78] : memref<512x128xf32, #tpu.memory_space<any>> -> memref<1x128xf32, #tpu.memory_space<any>>
      %c7_i32_79 = arith.constant 7 : i32
      %c0_i32_80 = arith.constant 0 : i32
      %131 = tpu.memref_slice %arg5[%78, %c7_i32_79, %c0_i32_80] : memref<2x8x128xf32, #tpu.memory_space<vmem>> -> memref<1x1x128xf32, #tpu.memory_space<vmem>>
      %132 = tpu.memref_squeeze %131 : memref<1x1x128xf32, #tpu.memory_space<vmem>> -> memref<1x128xf32, #tpu.memory_space<vmem>>
      %133 = tpu.memref_slice %arg6[%78, %c7_i32_77] : memref<2x8x!tpu.dma_semaphore, #tpu.memory_space<semaphore_mem>> -> memref<1x1x!tpu.dma_semaphore, #tpu.memory_space<semaphore_mem>>
      %134 = tpu.memref_squeeze %133 : memref<1x1x!tpu.dma_semaphore, #tpu.memory_space<semaphore_mem>> -> memref<!tpu.dma_semaphore, #tpu.memory_space<semaphore_mem>>
      tpu.enqueue_dma source(%130 : memref<1x128xf32, #tpu.memory_space<any>>) target(%132 : memref<1x128xf32, #tpu.memory_space<vmem>>) target_semaphore(%134 : memref<!tpu.dma_semaphore, #tpu.memory_space<semaphore_mem>>)
    } else {
    }
    %c0_i32_3 = arith.constant 0 : i32
    %c0_i32_4 = arith.constant 0 : i32
    %c0_i32_5 = arith.constant 0 : i32
    %10 = tpu.memref_slice %arg3[%c0_i32_4, %c0_i32_5] : memref<512x128xf32, #tpu.memory_space<any>> -> memref<1x128xf32, #tpu.memory_space<any>>
    %c0_i32_6 = arith.constant 0 : i32
    %c0_i32_7 = arith.constant 0 : i32
    %11 = tpu.memref_slice %arg5[%2, %c0_i32_6, %c0_i32_7] : memref<2x8x128xf32, #tpu.memory_space<vmem>> -> memref<1x1x128xf32, #tpu.memory_space<vmem>>
    %12 = tpu.memref_squeeze %11 : memref<1x1x128xf32, #tpu.memory_space<vmem>> -> memref<1x128xf32, #tpu.memory_space<vmem>>
    %13 = tpu.memref_slice %arg6[%2, %c0_i32_3] : memref<2x8x!tpu.dma_semaphore, #tpu.memory_space<semaphore_mem>> -> memref<1x1x!tpu.dma_semaphore, #tpu.memory_space<semaphore_mem>>
    %14 = tpu.memref_squeeze %13 : memref<1x1x!tpu.dma_semaphore, #tpu.memory_space<semaphore_mem>> -> memref<!tpu.dma_semaphore, #tpu.memory_space<semaphore_mem>>
    tpu.wait_dma2 semaphore(%14 : memref<!tpu.dma_semaphore, #tpu.memory_space<semaphore_mem>>) src(%10 : memref<1x128xf32, #tpu.memory_space<any>>) dst(%12 : memref<1x128xf32, #tpu.memory_space<vmem>>)
    %c1_i32_8 = arith.constant 1 : i32
    %c0_i32_9 = arith.constant 0 : i32
    %c0_i32_10 = arith.constant 0 : i32
    %15 = tpu.memref_slice %arg3[%c0_i32_9, %c0_i32_10] : memref<512x128xf32, #tpu.memory_space<any>> -> memref<1x128xf32, #tpu.memory_space<any>>
    %c1_i32_11 = arith.constant 1 : i32
    %c0_i32_12 = arith.constant 0 : i32
    %16 = tpu.memref_slice %arg5[%2, %c1_i32_11, %c0_i32_12] : memref<2x8x128xf32, #tpu.memory_space<vmem>> -> memref<1x1x128xf32, #tpu.memory_space<vmem>>
    %17 = tpu.memref_squeeze %16 : memref<1x1x128xf32, #tpu.memory_space<vmem>> -> memref<1x128xf32, #tpu.memory_space<vmem>>
    %18 = tpu.memref_slice %arg6[%2, %c1_i32_8] : memref<2x8x!tpu.dma_semaphore, #tpu.memory_space<semaphore_mem>> -> memref<1x1x!tpu.dma_semaphore, #tpu.memory_space<semaphore_mem>>
    %19 = tpu.memref_squeeze %18 : memref<1x1x!tpu.dma_semaphore, #tpu.memory_space<semaphore_mem>> -> memref<!tpu.dma_semaphore, #tpu.memory_space<semaphore_mem>>
    tpu.wait_dma2 semaphore(%19 : memref<!tpu.dma_semaphore, #tpu.memory_space<semaphore_mem>>) src(%15 : memref<1x128xf32, #tpu.memory_space<any>>) dst(%17 : memref<1x128xf32, #tpu.memory_space<vmem>>)
    %c2_i32_13 = arith.constant 2 : i32
    %c0_i32_14 = arith.constant 0 : i32
    %c0_i32_15 = arith.constant 0 : i32
    %20 = tpu.memref_slice %arg3[%c0_i32_14, %c0_i32_15] : memref<512x128xf32, #tpu.memory_space<any>> -> memref<1x128xf32, #tpu.memory_space<any>>
    %c2_i32_16 = arith.constant 2 : i32
    %c0_i32_17 = arith.constant 0 : i32
    %21 = tpu.memref_slice %arg5[%2, %c2_i32_16, %c0_i32_17] : memref<2x8x128xf32, #tpu.memory_space<vmem>> -> memref<1x1x128xf32, #tpu.memory_space<vmem>>
    %22 = tpu.memref_squeeze %21 : memref<1x1x128xf32, #tpu.memory_space<vmem>> -> memref<1x128xf32, #tpu.memory_space<vmem>>
    %23 = tpu.memref_slice %arg6[%2, %c2_i32_13] : memref<2x8x!tpu.dma_semaphore, #tpu.memory_space<semaphore_mem>> -> memref<1x1x!tpu.dma_semaphore, #tpu.memory_space<semaphore_mem>>
    %24 = tpu.memref_squeeze %23 : memref<1x1x!tpu.dma_semaphore, #tpu.memory_space<semaphore_mem>> -> memref<!tpu.dma_semaphore, #tpu.memory_space<semaphore_mem>>
    tpu.wait_dma2 semaphore(%24 : memref<!tpu.dma_semaphore, #tpu.memory_space<semaphore_mem>>) src(%20 : memref<1x128xf32, #tpu.memory_space<any>>) dst(%22 : memref<1x128xf32, #tpu.memory_space<vmem>>)
    %c3_i32 = arith.constant 3 : i32
    %c0_i32_18 = arith.constant 0 : i32
    %c0_i32_19 = arith.constant 0 : i32
    %25 = tpu.memref_slice %arg3[%c0_i32_18, %c0_i32_19] : memref<512x128xf32, #tpu.memory_space<any>> -> memref<1x128xf32, #tpu.memory_space<any>>
    %c3_i32_20 = arith.constant 3 : i32
    %c0_i32_21 = arith.constant 0 : i32
    %26 = tpu.memref_slice %arg5[%2, %c3_i32_20, %c0_i32_21] : memref<2x8x128xf32, #tpu.memory_space<vmem>> -> memref<1x1x128xf32, #tpu.memory_space<vmem>>
    %27 = tpu.memref_squeeze %26 : memref<1x1x128xf32, #tpu.memory_space<vmem>> -> memref<1x128xf32, #tpu.memory_space<vmem>>
    %28 = tpu.memref_slice %arg6[%2, %c3_i32] : memref<2x8x!tpu.dma_semaphore, #tpu.memory_space<semaphore_mem>> -> memref<1x1x!tpu.dma_semaphore, #tpu.memory_space<semaphore_mem>>
    %29 = tpu.memref_squeeze %28 : memref<1x1x!tpu.dma_semaphore, #tpu.memory_space<semaphore_mem>> -> memref<!tpu.dma_semaphore, #tpu.memory_space<semaphore_mem>>
    tpu.wait_dma2 semaphore(%29 : memref<!tpu.dma_semaphore, #tpu.memory_space<semaphore_mem>>) src(%25 : memref<1x128xf32, #tpu.memory_space<any>>) dst(%27 : memref<1x128xf32, #tpu.memory_space<vmem>>)
    %c4_i32 = arith.constant 4 : i32
    %c0_i32_22 = arith.constant 0 : i32
    %c0_i32_23 = arith.constant 0 : i32
    %30 = tpu.memref_slice %arg3[%c0_i32_22, %c0_i32_23] : memref<512x128xf32, #tpu.memory_space<any>> -> memref<1x128xf32, #tpu.memory_space<any>>
    %c4_i32_24 = arith.constant 4 : i32
    %c0_i32_25 = arith.constant 0 : i32
    %31 = tpu.memref_slice %arg5[%2, %c4_i32_24, %c0_i32_25] : memref<2x8x128xf32, #tpu.memory_space<vmem>> -> memref<1x1x128xf32, #tpu.memory_space<vmem>>
    %32 = tpu.memref_squeeze %31 : memref<1x1x128xf32, #tpu.memory_space<vmem>> -> memref<1x128xf32, #tpu.memory_space<vmem>>
    %33 = tpu.memref_slice %arg6[%2, %c4_i32] : memref<2x8x!tpu.dma_semaphore, #tpu.memory_space<semaphore_mem>> -> memref<1x1x!tpu.dma_semaphore, #tpu.memory_space<semaphore_mem>>
    %34 = tpu.memref_squeeze %33 : memref<1x1x!tpu.dma_semaphore, #tpu.memory_space<semaphore_mem>> -> memref<!tpu.dma_semaphore, #tpu.memory_space<semaphore_mem>>
    tpu.wait_dma2 semaphore(%34 : memref<!tpu.dma_semaphore, #tpu.memory_space<semaphore_mem>>) src(%30 : memref<1x128xf32, #tpu.memory_space<any>>) dst(%32 : memref<1x128xf32, #tpu.memory_space<vmem>>)
    %c5_i32 = arith.constant 5 : i32
    %c0_i32_26 = arith.constant 0 : i32
    %c0_i32_27 = arith.constant 0 : i32
    %35 = tpu.memref_slice %arg3[%c0_i32_26, %c0_i32_27] : memref<512x128xf32, #tpu.memory_space<any>> -> memref<1x128xf32, #tpu.memory_space<any>>
    %c5_i32_28 = arith.constant 5 : i32
    %c0_i32_29 = arith.constant 0 : i32
    %36 = tpu.memref_slice %arg5[%2, %c5_i32_28, %c0_i32_29] : memref<2x8x128xf32, #tpu.memory_space<vmem>> -> memref<1x1x128xf32, #tpu.memory_space<vmem>>
    %37 = tpu.memref_squeeze %36 : memref<1x1x128xf32, #tpu.memory_space<vmem>> -> memref<1x128xf32, #tpu.memory_space<vmem>>
    %38 = tpu.memref_slice %arg6[%2, %c5_i32] : memref<2x8x!tpu.dma_semaphore, #tpu.memory_space<semaphore_mem>> -> memref<1x1x!tpu.dma_semaphore, #tpu.memory_space<semaphore_mem>>
    %39 = tpu.memref_squeeze %38 : memref<1x1x!tpu.dma_semaphore, #tpu.memory_space<semaphore_mem>> -> memref<!tpu.dma_semaphore, #tpu.memory_space<semaphore_mem>>
    tpu.wait_dma2 semaphore(%39 : memref<!tpu.dma_semaphore, #tpu.memory_space<semaphore_mem>>) src(%35 : memref<1x128xf32, #tpu.memory_space<any>>) dst(%37 : memref<1x128xf32, #tpu.memory_space<vmem>>)
    %c6_i32 = arith.constant 6 : i32
    %c0_i32_30 = arith.constant 0 : i32
    %c0_i32_31 = arith.constant 0 : i32
    %40 = tpu.memref_slice %arg3[%c0_i32_30, %c0_i32_31] : memref<512x128xf32, #tpu.memory_space<any>> -> memref<1x128xf32, #tpu.memory_space<any>>
    %c6_i32_32 = arith.constant 6 : i32
    %c0_i32_33 = arith.constant 0 : i32
    %41 = tpu.memref_slice %arg5[%2, %c6_i32_32, %c0_i32_33] : memref<2x8x128xf32, #tpu.memory_space<vmem>> -> memref<1x1x128xf32, #tpu.memory_space<vmem>>
    %42 = tpu.memref_squeeze %41 : memref<1x1x128xf32, #tpu.memory_space<vmem>> -> memref<1x128xf32, #tpu.memory_space<vmem>>
    %43 = tpu.memref_slice %arg6[%2, %c6_i32] : memref<2x8x!tpu.dma_semaphore, #tpu.memory_space<semaphore_mem>> -> memref<1x1x!tpu.dma_semaphore, #tpu.memory_space<semaphore_mem>>
    %44 = tpu.memref_squeeze %43 : memref<1x1x!tpu.dma_semaphore, #tpu.memory_space<semaphore_mem>> -> memref<!tpu.dma_semaphore, #tpu.memory_space<semaphore_mem>>
    tpu.wait_dma2 semaphore(%44 : memref<!tpu.dma_semaphore, #tpu.memory_space<semaphore_mem>>) src(%40 : memref<1x128xf32, #tpu.memory_space<any>>) dst(%42 : memref<1x128xf32, #tpu.memory_space<vmem>>)
    %c7_i32 = arith.constant 7 : i32
    %c0_i32_34 = arith.constant 0 : i32
    %c0_i32_35 = arith.constant 0 : i32
    %45 = tpu.memref_slice %arg3[%c0_i32_34, %c0_i32_35] : memref<512x128xf32, #tpu.memory_space<any>> -> memref<1x128xf32, #tpu.memory_space<any>>
    %c7_i32_36 = arith.constant 7 : i32
    %c0_i32_37 = arith.constant 0 : i32
    %46 = tpu.memref_slice %arg5[%2, %c7_i32_36, %c0_i32_37] : memref<2x8x128xf32, #tpu.memory_space<vmem>> -> memref<1x1x128xf32, #tpu.memory_space<vmem>>
    %47 = tpu.memref_squeeze %46 : memref<1x1x128xf32, #tpu.memory_space<vmem>> -> memref<1x128xf32, #tpu.memory_space<vmem>>
    %48 = tpu.memref_slice %arg6[%2, %c7_i32] : memref<2x8x!tpu.dma_semaphore, #tpu.memory_space<semaphore_mem>> -> memref<1x1x!tpu.dma_semaphore, #tpu.memory_space<semaphore_mem>>
    %49 = tpu.memref_squeeze %48 : memref<1x1x!tpu.dma_semaphore, #tpu.memory_space<semaphore_mem>> -> memref<!tpu.dma_semaphore, #tpu.memory_space<semaphore_mem>>
    tpu.wait_dma2 semaphore(%49 : memref<!tpu.dma_semaphore, #tpu.memory_space<semaphore_mem>>) src(%45 : memref<1x128xf32, #tpu.memory_space<any>>) dst(%47 : memref<1x128xf32, #tpu.memory_space<vmem>>)
    %50 = arith.index_cast %2 : i32 to index
    %c0 = arith.constant 0 : index
    %c0_38 = arith.constant 0 : index
    %51 = vector.load %arg5[%50, %c0, %c0_38] : memref<2x8x128xf32, #tpu.memory_space<vmem>>, vector<1x8x128xf32>
    %52 = vector.shape_cast %51 : vector<1x8x128xf32> to vector<8x128xf32>
    %53 = arith.mulf %52, %52 : vector<8x128xf32>
    %cst = arith.constant dense<0.000000e+00> : vector<8xf32>
    %54 = vector.multi_reduction <add>, %53, %cst [1] : vector<8x128xf32> to vector<8xf32>
    %55 = vector.shape_cast %54 : vector<8xf32> to vector<8x1xf32>
    %cst_39 = arith.constant 0.000000e+00 : f32
    %56 = vector.broadcast %cst_39 : f32 to vector<8x1xf32>
    %57 = arith.cmpf ogt, %55, %56 : vector<8x1xf32>
    %58 = math.rsqrt %55 : vector<8x1xf32>
    %cst_40 = arith.constant 0.000000e+00 : f32
    %59 = vector.broadcast %cst_40 : f32 to vector<8x1xf32>
    %60 = arith.select %57, %58, %59 : vector<8x1xi1>, vector<8x1xf32>
    %61 = vector.broadcast %60 : vector<8x1xf32> to vector<8x128xf32>
    %62 = arith.mulf %52, %61 : vector<8x128xf32>
    %cst_41 = arith.constant dense<0.000000e+00> : vector<128xf32>
    %63 = vector.multi_reduction <add>, %62, %cst_41 [0] : vector<8x128xf32> to vector<128xf32>
    %64 = vector.shape_cast %63 : vector<128xf32> to vector<1x128xf32>
    %65 = arith.extui %57 : vector<8x1xi1> to vector<8x1xi32>
    %66 = arith.sitofp %65 : vector<8x1xi32> to vector<8x1xf32>
    %cst_42 = arith.constant dense<0.000000e+00> : vector<1xf32>
    %67 = vector.multi_reduction <add>, %66, %cst_42 [0] : vector<8x1xf32> to vector<1xf32>
    %68 = vector.shape_cast %67 : vector<1xf32> to vector<1x1xf32>
    %cst_43 = arith.constant 0.000000e+00 : f32
    %69 = vector.broadcast %cst_43 : f32 to vector<1x1xf32>
    %70 = arith.cmpf ogt, %68, %69 : vector<1x1xf32>
    %cst_44 = arith.constant 1.000000e+00 : f32
    %71 = vector.broadcast %cst_44 : f32 to vector<1x1xf32>
    %72 = arith.select %70, %68, %71 : vector<1x1xi1>, vector<1x1xf32>
    %73 = vector.broadcast %72 : vector<1x1xf32> to vector<1x128xf32>
    %74 = arith.divf %64, %73 : vector<1x128xf32>
    %75 = arith.index_cast %arg1 : i32 to index
    %c0_45 = arith.constant 0 : index
    %76 = vector.load %arg4[%75, %c0_45] : memref<8x128xf32, #tpu.memory_space<vmem>>, vector<1x128xf32>
    tpu.vector_store %arg4[%75, %c0_45], %74 {strides = array<i32>} : memref<8x128xf32, #tpu.memory_space<vmem>>, vector<1x128xf32>,
    return
  }
  func.func @transform_1(%arg0: i32, %arg1: i32, %arg2: memref<16x8xi32, #tpu.memory_space<smem>>) -> (i32, i32) {
    %c0_i32 = arith.constant 0 : i32
    %c0_i32_0 = arith.constant 0 : i32
    return %arg0, %c0_i32 : i32, i32
  }
}

</mosaic_0001>

<bundles_post_ra>
// kernel: tpu_custom_call.1
= control target key start
LH: loop header
LB: loop body
LE: loop exit
PB: predicated region body
PF: predicated region fallthrough
CT: control target
= control target key end

     0   :  { %s2183_s0 = inlined_call_operand.vmem [shape: s32[16,8], index: 0, kind: input, shape index: {}]   ;;  %s2184_s1 = inlined_call_operand.hbm [shape: f32[512,128], index: 1, kind: input, shape index: {}]   ;;  %s2185_s2 = inlined_call_operand.hbm [shape: f32[16,128], index: 2, kind: output, shape index: {}]  }
   0x1   :  { %2206 = sst [smem:[#allocation81_spill]] %s2185_s2  ;;  %s7_s11 = sshll.u32 %s2183_s0, 4  ;;  %s8_s11 = int_to_ptr.vmem [resolvable:$true] %s7_s11 }
   0x2   :  { %s949_s12 = scalar_lea.vmem %s8_s11, 256  ;;  %p954_p1 = scmp.lt.s32.totalorder %s8_s11, %s8_s11 }
   0x3   :  { %p950_p0 = scmp.ne.s32.totalorder %s8_s11, %s949_s12  ;;  %p955_p2 = scmp.lt.s32.totalorder %s949_s12, %s949_s12 }
   0x5   :  { %p956_p3 = por %p955_p2, %p954_p1 }
   0x7   :  { %p957_p4 = pnand %p956_p3, %p950_p0 }
   0x9   :  { %960 = shalt.err (!%p957_p4)  }
   0xa   :  { %s1499_s13 = smov [#allocation5]  }
   0xb   :  { %10 = dma.vmem_to_smem %s8_s11, 256, %s1499_s13, [#allocation4] }
   0xc   :  { %1457 = dma.done.wait [#allocation4], 256 }
   0xd   :  { %1458 = vsyncadd [#allocation4], 4294967040 }
   0xe   :  { %12 = sfence }
   0xf   :  { %13 = vsyncpa [#allocation7], 0 }
  0x10   :  { %15 = vsyncpa [#allocation7 + $0x1], 0  ;;  %s1521_s14 = smov 0   ;;  %s1523_s15 = smov 0  }
  0x11   :  { %s1525_s0 = smov 0   ;;  %s1527_s16 = smov 0  }
  0x12   :  { %s1529_s17 = smov 0  }
  0x13 LB: > { %2207 = sst [smem:[#allocation68_spill]] %s1481_s14  ;;  %s1547_s18 = sadd.s32 1, %s1489_s0  ;;  %s1497_s17 = sphi %s1529_s17, %s21_s17   ;;  %s1493_s16 = sphi %s1527_s16, %s2279_s16   ;;  %s1489_s0 = sphi %s1525_s0, %s2278_s0   ;;  %s1485_s15 = sphi %s1523_s15, %s2277_s15   ;;  %s1481_s14 = sphi %s1521_s14, %s2276_s14  }
  0x14   : > { %2208 = sst [smem:[#allocation69_spill]] %s1485_s15  ;;  %p28_p5 = scmp.ge.s32.totalorder %s1547_s18, 8 }
  0x15   : > { %2209 = sst [smem:[#allocation70_spill]] %s1489_s0  ;;  %s30_s19 = sadd.s32 1, %s1493_s16 }
  0x16   : > { %2210 = sst [smem:[#allocation71_spill]] %s1493_s16  ;;  %s757_s20 = sadd.s32 4294967295, %s1497_s17  }
  0x17   : > { %2211 = sst [smem:[#allocation72_spill]] %s1497_s17  ;;  %s2281_s19 = smov (!%p28_p5, %s30_s19), %s1493_s16 }
  0x18   : > { %s1553_s21 = scalar_select %p28_p5, 0, %s1547_s18  }
  0x19   : > { %p46_p6 = scmp.ne.s32.totalorder %s1485_s15, %s1481_s14  ;;  %p47_p7 = scmp.eq.s32.totalorder %s757_s20, 15 }
  0x1a   : > { %2212 = sst [smem:[#allocation73_spill]] %s1553_s21  ;;  %p32_p8 = scmp.ge.s32.totalorder %s2281_s19, 2 }
  0x1b   : > { %p1558_p9 = por %p47_p7, %p46_p6  ;;  %s37_s23 = sadd.s32 1, %s1485_s15 }
  0x1c   : > { %s2283_s19 = smov (%p32_p8, %s2281_s19), 0  ;;  %p41_p10 = scmp.eq.s32.totalorder %s1497_s17, 15 }
  0x1d   : > { %s2213_s22 = scalar_select %p1558_p9, 1, 0 }
  0x1e   : > { %2215 = sst [smem:[#allocation75_spill]] %s2283_s19  ;;  %s34_s24 = ssub.s32 %s1493_s16, %s2283_s19 }
  0x1f   : > { %2214 = sst [smem:[#allocation74_spill]] %s2213_s22  ;;  %p35_p11 = scmp.eq.s32.totalorder %s34_s24, 0 }
  0x20   : > { %p758_p12 = scmp.ne.s32.totalorder %s34_s24, 0  ;;  %p759_p0 = scmp.ge.s32.totalorder %s1497_s17, 16 }
  0x21   : > { %s1569_s25 = scalar_select %p35_p11, %s1485_s15, %s37_s23  }
  0x22   : > { %p1571_p13 = por %p758_p12, %p41_p10  ;;  %56 = sbr.rel (%p759_p0) target bundleno = 711 (0x2c7), region = 12 }
  0x23   : > { %2216 = sst [smem:[#allocation76_spill]] %s1569_s25 }
  0x24   : > { %s2217_s26 = scalar_select %p1571_p13, 1, 0 }
  0x26   : > { %2218 = sst [smem:[#allocation77_spill]] %s2217_s26 }
  0x29   : > { %s2186_s27 = sand.u32 1, %s1485_s15   ;;  %s761_s28 = sshll.u32 %s1493_s16, 3 }
  0x2a   : > { %s1580_s29 = sshll.u32 %s2186_s27, 3  ;;  %s65_s30 = sadd.s32 %s1489_s0, %s761_s28 }
  0x2b   : > { %s67_s3 = ssub.s32 0, %s1489_s0  ;;  %p900_p1 = scmp.eq.s32.totalorder %s1489_s0, 0 }
  0x2c   : > { %s1585_s4 = smin.u32 %s1489_s0, %s67_s3  ;;  %s1589_s6 = sshll.u32 %s65_s30, 7 }
  0x2d   : > { %s2187_s5 = sand.u32 1, %s1585_s4   ;;  %s94_s7 = sadd.s32 1, %s1589_s6 }
  0x2e   : > { %s845_s8 = scalar_select %p900_p1, [#allocation5], [#allocation42] }
  0x2f   : > { %s846_s9 = scalar_select %p900_p1, %s1589_s6, 0 }
  0x30   : > { %s766_s10 = sshll.u32 %s2187_s5, 3  ;;  %s2285_s7 = smov (!%p900_p1, %s94_s7), 0 }
  0x31   : > { %s77_s12 = sld [smem:[%s845_s8 + %s846_s9]]  ;;  %s1600_s13 = scalar_lea.vmem [#allocation2], %s766_s10 }
  0x32   : > { %2219 = sst [smem:[#allocation78_spill]] %s1600_s13  ;;  %s90_s20 = sshll.u32 %s1600_s13, 4  ;;  %s1603_s20 = int_to_ptr.vmem [resolvable:$true] %s90_s20 }
  0x33   : > { %s592_s23 = scalar_lea.vmem %s1600_s13, 1 [#allocation2]  ;;  %s1610_s28 = scalar_lea.sflag [#allocation3], %s766_s10 }
  0x34   : > { %s848_s24 = scalar_select %p900_p1, [#allocation5], [#allocation43] }
  0x35   : > { %s1613_s30 = scalar_lea.sflag %s1610_s28, 1 [#allocation3]  ;;  %s108_s3 = sshll.u32 %s592_s23, 4  ;;  %s1620_s3 = int_to_ptr.vmem [resolvable:$true] %s108_s3 }
  0x36   : > { %s1615_s9 = sld [smem:[%s848_s24 + %s2285_s7]]  ;;  %s1627_s25 = scalar_lea.hbm %s2184_s1, 8192 }
  0x37   : > { %s765_s8 = sshll.u32 %s77_s12, 4 }
  0x38   : > { %s79_s11 = scalar_lea.hbm %s2184_s1, %s765_s8 }
  0x39   : > { %s961_s19 = scalar_lea.hbm %s79_s11, 16  ;;  %p966_p5 = scmp.lt.u32.totalorder %s79_s11, %s2184_s1 }
  0x3a   : > { %p962_p2 = scmp.ne.s32.totalorder %s79_s11, %s961_s19  ;;  %p967_p6 = scmp.lt.u32.totalorder %s1627_s25, %s961_s19 }
  0x3b   : > { %p969_p8 = scmp.lt.u32.totalorder %s961_s19, %s79_s11 }
  0x3c   : > { %p963_p3 = pnand %p962_p2, %p900_p1  ;;  %p968_p7 = por %p967_p6, %p966_p5 }
  0x3e   : > { %p964_p4 = pneg %p963_p3  ;;  %p970_p10 = por %p969_p8, %p968_p7 }
  0x40   : > { %p971_p11 = pnand %p970_p10, %p964_p4 }
  0x42   : > { %974 = shalt.err (!%p971_p11)  }
  0x43   : > { %s975_s27 = scalar_lea.vmem %s1603_s20, 16  ;;  %s1500_s21 = smov [#allocation2]  }
  0x44   : > { %p976_p12 = scmp.ne.s32.totalorder %s1603_s20, %s975_s27  ;;  %s979_s5 = sshll.u32 %s1500_s21, 4  ;;  %s1637_s5 = int_to_ptr.vmem [resolvable:$false] %s979_s5 }
  0x45   : > { %s1640_s7 = scalar_lea.vmem %s1637_s5, 256  ;;  %p982_p3 = scmp.lt.s32.totalorder %s1603_s20, %s1637_s5 }
  0x46   : > { %p977_p0 = pnand %p976_p12, %p900_p1  ;;  %p983_p4 = scmp.lt.s32.totalorder %s1640_s7, %s975_s27 }
  0x48   : > { %p978_p2 = pneg %p977_p0  ;;  %p984_p5 = por %p983_p4, %p982_p3 }
  0x4a   : > { %p985_p6 = pnand %p984_p5, %p978_p2 }
  0x4c   : > { %988 = shalt.err (!%p985_p6)  }
  0x4d   : > { %847 = dma.hbm_to_vmem [thread:$0]  (%p900_p1), %s79_s11, 16, %s1603_s20, %s1610_s28 }
  0x4e   : > { %s851_s19 = scalar_select %p900_p1, [#allocation5], [#allocation44] }
  0x4f   : > { %s2220_s24 = sadd.s32 2, %s1589_s6  ;;  %s600_s8 = scalar_lea.vmem %s1600_s13, 2 [#allocation2] }
  0x50   : > { %s2287_s24 = smov (!%p900_p1, %s2220_s24), 0  ;;  %s1657_s10 = scalar_lea.sflag %s1610_s28, 2 [#allocation3] }
  0x51   : > { %s767_s23 = sshll.u32 %s1615_s9, 4  ;;  %s1660_s12 = sld [smem:[%s851_s19 + %s2287_s24]] }
  0x52   : > { %s97_s22 = scalar_lea.hbm %s2184_s1, %s767_s23  ;;  %s126_s14 = sshll.u32 %s600_s8, 4  ;;  %s1682_s14 = int_to_ptr.vmem [resolvable:$true] %s126_s14 }
  0x53   : > { %s989_s17 = scalar_lea.hbm %s97_s22, 16  ;;  %p994_p11 = scmp.lt.u32.totalorder %s97_s22, %s2184_s1 }
  0x54   : > { %p990_p7 = scmp.ne.s32.totalorder %s97_s22, %s989_s17  ;;  %p995_p12 = scmp.lt.u32.totalorder %s1627_s25, %s989_s17 }
  0x55   : > { %p997_p2 = scmp.lt.u32.totalorder %s989_s17, %s97_s22 }
  0x56   : > { %p991_p8 = pnand %p990_p7, %p900_p1  ;;  %p996_p0 = por %p995_p12, %p994_p11 }
  0x58   : > { %p992_p10 = pneg %p991_p8  ;;  %p998_p3 = por %p997_p2, %p996_p0 }
  0x5a   : > { %p999_p4 = pnand %p998_p3, %p992_p10 }
  0x5c   : > { %1002 = shalt.err (!%p999_p4)  }
  0x5d   : > { %s1003_s9 = scalar_lea.vmem %s1620_s3, 16  ;;  %p1010_p8 = scmp.lt.s32.totalorder %s1620_s3, %s1637_s5 }
  0x5e   : > { %p1004_p5 = scmp.ne.s32.totalorder %s1620_s3, %s1003_s9  ;;  %p1011_p9 = scmp.lt.s32.totalorder %s1640_s7, %s1003_s9 }
  0x60   : > { %p1005_p6 = pnand %p1004_p5, %p900_p1  ;;  %p1012_p13 = por %p1011_p9, %p1010_p8 }
  0x62   : > { %p1006_p7 = pneg %p1005_p6 }
  0x64   : > { %p1013_p11 = pnand %p1012_p13, %p1006_p7 }
  0x66   : > { %1016 = shalt.err (!%p1013_p11)  }
  0x67   : > { %850 = dma.hbm_to_vmem [thread:$0]  (%p900_p1), %s97_s22, 16, %s1620_s3, %s1613_s30 }
  0x68   : > { %s130_s17 = sadd.s32 3, %s1589_s6  ;;  %s770_s24 = sshll.u32 %s1660_s12, 4 }
  0x69   : > { %s854_s19 = scalar_select %p900_p1, [#allocation5], [#allocation45] }
  0x6a   : > { %s2289_s17 = smov (!%p900_p1, %s130_s17), 0  ;;  %s608_s8 = scalar_lea.vmem %s1600_s13, 3 [#allocation2] }
  0x6b   : > { %s115_s21 = scalar_lea.hbm %s2184_s1, %s770_s24  ;;  %s1694_s11 = sld [smem:[%s854_s19 + %s2289_s17]] }
  0x6c   : > { %s1017_s20 = scalar_lea.hbm %s115_s21, 16  ;;  %p1022_p12 = scmp.lt.u32.totalorder %s115_s21, %s2184_s1 }
  0x6d   : > { %p1018_p9 = scmp.ne.s32.totalorder %s115_s21, %s1017_s20  ;;  %p1023_p0 = scmp.lt.u32.totalorder %s1627_s25, %s1017_s20 }
  0x6e   : > { %p1025_p3 = scmp.lt.u32.totalorder %s1017_s20, %s115_s21 }
  0x6f   : > { %p1019_p13 = pnand %p1018_p9, %p900_p1  ;;  %p1024_p2 = por %p1023_p0, %p1022_p12 }
  0x71   : > { %p1020_p10 = pneg %p1019_p13  ;;  %p1026_p4 = por %p1025_p3, %p1024_p2 }
  0x73   : > { %p1027_p5 = pnand %p1026_p4, %p1020_p10 }
  0x75   : > { %1030 = shalt.err (!%p1027_p5)  }
  0x76   : > { %s1031_s12 = scalar_lea.vmem %s1682_s14, 16  ;;  %p1038_p11 = scmp.lt.s32.totalorder %s1682_s14, %s1637_s5 }
  0x77   : > { %p1032_p6 = scmp.ne.s32.totalorder %s1682_s14, %s1031_s12  ;;  %p1039_p9 = scmp.lt.s32.totalorder %s1640_s7, %s1031_s12 }
  0x79   : > { %p1033_p7 = pnand %p1032_p6, %p900_p1  ;;  %p1040_p13 = por %p1039_p9, %p1038_p11 }
  0x7b   : > { %p1034_p8 = pneg %p1033_p7 }
  0x7d   : > { %p1041_p0 = pnand %p1040_p13, %p1034_p8 }
  0x7f   : > { %1044 = shalt.err (!%p1041_p0)  }
  0x80   : > { %853 = dma.hbm_to_vmem [thread:$0]  (%p900_p1), %s115_s21, 16, %s1682_s14, %s1657_s10 }
  0x81   : > { %s1714_s9 = scalar_lea.sflag %s1610_s28, 3 [#allocation3]  ;;  %s144_s17 = sshll.u32 %s608_s8, 4  ;;  %s1716_s17 = int_to_ptr.vmem [resolvable:$true] %s144_s17 }
  0x82   : > { %s148_s19 = sadd.s32 4, %s1589_s6  ;;  %s773_s23 = sshll.u32 %s1694_s11, 4 }
  0x83   : > { %s857_s24 = scalar_select %p900_p1, [#allocation5], [#allocation46] }
  0x84   : > { %s2291_s19 = smov (!%p900_p1, %s148_s19), 0  ;;  %s616_s27 = scalar_lea.vmem %s1600_s13, 4 [#allocation2] }
  0x85   : > { %s133_s3 = scalar_lea.hbm %s2184_s1, %s773_s23  ;;  %s1728_s12 = sld [smem:[%s857_s24 + %s2291_s19]] }
  0x86   : > { %s1045_s14 = scalar_lea.hbm %s133_s3, 16  ;;  %p1050_p3 = scmp.lt.u32.totalorder %s133_s3, %s2184_s1 }
  0x87   : > { %p1046_p10 = scmp.ne.s32.totalorder %s133_s3, %s1045_s14  ;;  %p1051_p4 = scmp.lt.u32.totalorder %s1627_s25, %s1045_s14 }
  0x88   : > { %p1053_p6 = scmp.lt.u32.totalorder %s1045_s14, %s133_s3 }
  0x89   : > { %p1047_p12 = pnand %p1046_p10, %p900_p1  ;;  %p1052_p5 = por %p1051_p4, %p1050_p3 }
  0x8b   : > { %p1048_p2 = pneg %p1047_p12  ;;  %p1054_p7 = por %p1053_p6, %p1052_p5 }
  0x8d   : > { %p1055_p8 = pnand %p1054_p7, %p1048_p2 }
  0x8f   : > { %1058 = shalt.err (!%p1055_p8)  }
  0x90   : > { %s1059_s11 = scalar_lea.vmem %s1716_s17, 16  ;;  %p1066_p0 = scmp.lt.s32.totalorder %s1716_s17, %s1637_s5 }
  0x91   : > { %p1060_p11 = scmp.ne.s32.totalorder %s1716_s17, %s1059_s11  ;;  %p1067_p10 = scmp.lt.s32.totalorder %s1640_s7, %s1059_s11 }
  0x93   : > { %p1061_p9 = pnand %p1060_p11, %p900_p1  ;;  %p1068_p12 = por %p1067_p10, %p1066_p0 }
  0x95   : > { %p1062_p13 = pneg %p1061_p9 }
  0x97   : > { %p1069_p3 = pnand %p1068_p12, %p1062_p13 }
  0x99   : > { %1072 = shalt.err (!%p1069_p3)  }
  0x9a   : > { %856 = dma.hbm_to_vmem [thread:$0]  (%p900_p1), %s133_s3, 16, %s1716_s17, %s1714_s9 }
  0x9b   : > { %s1748_s19 = scalar_lea.sflag %s1610_s28, 4 [#allocation3]  ;;  %s162_s24 = sshll.u32 %s616_s27, 4  ;;  %s1750_s24 = int_to_ptr.vmem [resolvable:$true] %s162_s24 }
  0x9c   : > { %s166_s23 = sadd.s32 5, %s1589_s6  ;;  %s776_s22 = sshll.u32 %s1728_s12, 4 }
  0x9d   : > { %s860_s20 = scalar_select %p900_p1, [#allocation5], [#allocation47] }
  0x9e   : > { %s2293_s23 = smov (!%p900_p1, %s166_s23), 0  ;;  %s624_s14 = scalar_lea.vmem %s1600_s13, 5 [#allocation2] }
  0x9f   : > { %s151_s11 = scalar_lea.hbm %s2184_s1, %s776_s22  ;;  %s1762_s2 = sld [smem:[%s860_s20 + %s2293_s23]] }
  0xa0   : > { %s1073_s17 = scalar_lea.hbm %s151_s11, 16  ;;  %p1078_p6 = scmp.lt.u32.totalorder %s151_s11, %s2184_s1 }
  0xa1   : > { %p1074_p2 = scmp.ne.s32.totalorder %s151_s11, %s1073_s17  ;;  %p1079_p7 = scmp.lt.u32.totalorder %s1627_s25, %s1073_s17 }
  0xa2   : > { %p1081_p11 = scmp.lt.u32.totalorder %s1073_s17, %s151_s11 }
  0xa3   : > { %p1075_p4 = pnand %p1074_p2, %p900_p1  ;;  %p1080_p8 = por %p1079_p7, %p1078_p6 }
  0xa5   : > { %p1076_p5 = pneg %p1075_p4  ;;  %p1082_p9 = por %p1081_p11, %p1080_p8 }
  0xa7   : > { %p1083_p13 = pnand %p1082_p9, %p1076_p5 }
  0xa9   : > { %1086 = shalt.err (!%p1083_p13)  }
  0xaa   : > { %s1087_s12 = scalar_lea.vmem %s1750_s24, 16  ;;  %p1094_p3 = scmp.lt.s32.totalorder %s1750_s24, %s1637_s5 }
  0xab   : > { %p1088_p0 = scmp.ne.s32.totalorder %s1750_s24, %s1087_s12  ;;  %p1095_p2 = scmp.lt.s32.totalorder %s1640_s7, %s1087_s12 }
  0xad   : > { %p1089_p10 = pnand %p1088_p0, %p900_p1  ;;  %p1096_p4 = por %p1095_p2, %p1094_p3 }
  0xaf   : > { %p1090_p12 = pneg %p1089_p10 }
  0xb1   : > { %p1097_p6 = pnand %p1096_p4, %p1090_p12 }
  0xb3   : > { %1100 = shalt.err (!%p1097_p6)  }
  0xb4   : > { %859 = dma.hbm_to_vmem [thread:$0]  (%p900_p1), %s151_s11, 16, %s1750_s24, %s1748_s19 }
  0xb5   : > { %s1782_s23 = scalar_lea.sflag %s1610_s28, 5 [#allocation3]  ;;  %s180_s20 = sshll.u32 %s624_s14, 4  ;;  %s1784_s20 = int_to_ptr.vmem [resolvable:$true] %s180_s20 }
  0xb6   : > { %s184_s22 = sadd.s32 6, %s1589_s6  ;;  %s779_s21 = sshll.u32 %s1762_s2, 4 }
  0xb7   : > { %s863_s8 = scalar_select %p900_p1, [#allocation5], [#allocation48] }
  0xb8   : > { %s2295_s22 = smov (!%p900_p1, %s184_s22), 0  ;;  %s632_s17 = scalar_lea.vmem %s1600_s13, 6 [#allocation2] }
  0xb9   : > { %s169_s12 = scalar_lea.hbm %s2184_s1, %s779_s21  ;;  %s1796_s26 = sld [smem:[%s863_s8 + %s2295_s22]] }
  0xba   : > { %s1101_s24 = scalar_lea.hbm %s169_s12, 16  ;;  %p1106_p11 = scmp.lt.u32.totalorder %s169_s12, %s2184_s1 }
  0xbb   : > { %p1102_p5 = scmp.ne.s32.totalorder %s169_s12, %s1101_s24  ;;  %p1107_p9 = scmp.lt.u32.totalorder %s1627_s25, %s1101_s24 }
  0xbc   : > { %p1109_p0 = scmp.lt.u32.totalorder %s1101_s24, %s169_s12 }
  0xbd   : > { %p1103_p7 = pnand %p1102_p5, %p900_p1  ;;  %p1108_p13 = por %p1107_p9, %p1106_p11 }
  0xbf   : > { %p1104_p8 = pneg %p1103_p7  ;;  %p1110_p10 = por %p1109_p0, %p1108_p13 }
  0xc1   : > { %p1111_p12 = pnand %p1110_p10, %p1104_p8 }
  0xc3   : > { %1114 = shalt.err (!%p1111_p12)  }
  0xc4   : > { %s1115_s2 = scalar_lea.vmem %s1784_s20, 16  ;;  %p1122_p6 = scmp.lt.s32.totalorder %s1784_s20, %s1637_s5 }
  0xc5   : > { %p1116_p3 = scmp.ne.s32.totalorder %s1784_s20, %s1115_s2  ;;  %p1123_p5 = scmp.lt.s32.totalorder %s1640_s7, %s1115_s2 }
  0xc7   : > { %p1117_p2 = pnand %p1116_p3, %p900_p1  ;;  %p1124_p7 = por %p1123_p5, %p1122_p6 }
  0xc9   : > { %p1118_p4 = pneg %p1117_p2 }
  0xcb   : > { %p1125_p9 = pnand %p1124_p7, %p1118_p4 }
  0xcd   : > { %1128 = shalt.err (!%p1125_p9)  }
  0xce   : > { %862 = dma.hbm_to_vmem [thread:$0]  (%p900_p1), %s169_s12, 16, %s1784_s20, %s1782_s23 }
  0xcf   : > { %s1816_s22 = scalar_lea.sflag %s1610_s28, 6 [#allocation3]  ;;  %s198_s8 = sshll.u32 %s632_s17, 4  ;;  %s1818_s8 = int_to_ptr.vmem [resolvable:$true] %s198_s8 }
  0xd0   : > { %2221 = sst [smem:[#allocation79_spill]] %s1816_s22  ;;  %s202_s21 = sadd.s32 7, %s1589_s6 }
  0xd1   : > { %s866_s27 = scalar_select %p900_p1, [#allocation5], [#allocation49] }
  0xd2   : > { %s2297_s21 = smov (!%p900_p1, %s202_s21), 0  ;;  %s782_s3 = sshll.u32 %s1796_s26, 4 }
  0xd3   : > { %s640_s24 = scalar_lea.vmem %s1600_s13, 7 [#allocation2]  ;;  %s187_s2 = scalar_lea.hbm %s2184_s1, %s782_s3 }
  0xd4   : > { %s1830_s15 = sld [smem:[%s866_s27 + %s2297_s21]]  ;;  %s1129_s20 = scalar_lea.hbm %s187_s2, 16 }
  0xd5   : > { %p1130_p8 = scmp.ne.s32.totalorder %s187_s2, %s1129_s20  ;;  %p1134_p0 = scmp.lt.u32.totalorder %s187_s2, %s2184_s1 }
  0xd6   : > { %p1135_p10 = scmp.lt.u32.totalorder %s1627_s25, %s1129_s20  ;;  %p1137_p3 = scmp.lt.u32.totalorder %s1129_s20, %s187_s2 }
  0xd7   : > { %p1131_p11 = pnand %p1130_p8, %p900_p1 }
  0xd8   : > { %p1136_p12 = por %p1135_p10, %p1134_p0 }
  0xd9   : > { %p1132_p13 = pneg %p1131_p11 }
  0xda   : > { %p1138_p2 = por %p1137_p3, %p1136_p12 }
  0xdc   : > { %p1139_p4 = pnand %p1138_p2, %p1132_p13 }
  0xde   : > { %1142 = shalt.err (!%p1139_p4)  }
  0xdf   : > { %s1143_s26 = scalar_lea.vmem %s1818_s8, 16  ;;  %p1150_p9 = scmp.lt.s32.totalorder %s1818_s8, %s1637_s5 }
  0xe0   : > { %p1144_p6 = scmp.ne.s32.totalorder %s1818_s8, %s1143_s26  ;;  %p1151_p8 = scmp.lt.s32.totalorder %s1640_s7, %s1143_s26 }
  0xe2   : > { %p1145_p5 = pnand %p1144_p6, %p900_p1  ;;  %p1152_p11 = por %p1151_p8, %p1150_p9 }
  0xe4   : > { %p1146_p7 = pneg %p1145_p5 }
  0xe6   : > { %p1153_p0 = pnand %p1152_p11, %p1146_p7 }
  0xe8   : > { %1156 = shalt.err (!%p1153_p0)  }
  0xe9   : > { %865 = dma.hbm_to_vmem [thread:$0]  (%p900_p1), %s187_s2, 16, %s1818_s8, %s1816_s22 }
  0xea   : > { %s1850_s21 = scalar_lea.sflag %s1610_s28, 7 [#allocation3]  ;;  %s216_s27 = sshll.u32 %s640_s24, 4  ;;  %s1852_s27 = int_to_ptr.vmem [resolvable:$true] %s216_s27 }
  0xeb   : > { %2222 = sst [smem:[#allocation80_spill]] %s1850_s21  ;;  %p2199_p13 = scmp.lt.s32.totalorder %s1547_s18, 8 }
  0xec   : > { %s2223_s3 = sand.u32 1, %s1585_s4   ;;  %s1860_s11 = sadd.s32 128, %s1589_s6 }
  0xed   : > { %s1857_s14 = ssub.s32 1, %s2223_s3  ;;  %s785_s17 = sshll.u32 %s1830_s15, 4 }
  0xee   : > { %s870_s20 = scalar_select %p2199_p13, [#allocation5], [#allocation50] }
  0xef   : > { %s791_s12 = sshll.u32 %s1857_s14, 3  ;;  %s205_s8 = scalar_lea.hbm %s2184_s1, %s785_s17 }
  0xf0   : > { %s1157_s2 = scalar_lea.hbm %s205_s8, 16  ;;  %p1162_p2 = scmp.lt.u32.totalorder %s205_s8, %s2184_s1 }
  0xf1   : > { %p1158_p10 = scmp.ne.s32.totalorder %s205_s8, %s1157_s2  ;;  %p1163_p4 = scmp.lt.u32.totalorder %s1627_s25, %s1157_s2 }
  0xf2   : > { %p1165_p5 = scmp.lt.u32.totalorder %s1157_s2, %s205_s8 }
  0xf3   : > { %p1159_p12 = pnand %p1158_p10, %p900_p1  ;;  %p1164_p6 = por %p1163_p4, %p1162_p2 }
  0xf5   : > { %p1160_p3 = pneg %p1159_p12  ;;  %p1166_p7 = por %p1165_p5, %p1164_p6 }
  0xf7   : > { %p1167_p9 = pnand %p1166_p7, %p1160_p3 }
  0xf9   : > { %1170 = shalt.err (!%p1167_p9)  }
  0xfa   : > { %s1171_s15 = scalar_lea.vmem %s1852_s27, 16  ;;  %p1178_p10 = scmp.lt.s32.totalorder %s1852_s27, %s1637_s5 }
  0xfb   : > { %p1172_p8 = scmp.ne.s32.totalorder %s1852_s27, %s1171_s15  ;;  %p1179_p12 = scmp.lt.s32.totalorder %s1640_s7, %s1171_s15 }
  0xfd   : > { %p1173_p11 = pnand %p1172_p8, %p900_p1  ;;  %p1180_p13 = por %p1179_p12, %p1178_p10 }
  0xff   : > { %p1174_p0 = pneg %p1173_p11 }
 0x101   : > { %p1181_p2 = pnand %p1180_p13, %p1174_p0 }
 0x103   : > { %1184 = shalt.err (!%p1181_p2)  }
 0x104   : > { %868 = dma.hbm_to_vmem [thread:$0]  (%p900_p1), %s205_s8, 16, %s1852_s27, %s1850_s21 }
 0x105   : > { %p2224_p3 = scmp.lt.s32.totalorder %s1547_s18, 8  ;;  %s1891_s3 = scalar_lea.vmem [#allocation2], %s791_s12 }
 0x106   : > { %s241_s17 = sshll.u32 %s1891_s3, 4  ;;  %s245_s26 = sadd.s32 1, %s1860_s11  ;;  %s1900_s17 = int_to_ptr.vmem [resolvable:$true] %s241_s17 }
 0x107   : > { %s871_s16 = scalar_select %p2224_p3, %s1860_s11, 0 }
 0x108   : > { %s654_s2 = scalar_lea.vmem %s1891_s3, 1 [#allocation2]  ;;  %p2225_p13 = pmov %p2224_p3 }
 0x109   : > { %s228_s6 = sld [smem:[%s870_s20 + %s871_s16]]  ;;  %p2226_p4 = pmov %p2224_p3 }
 0x10a   : > { %s873_s24 = scalar_select %p2225_p13, [#allocation5], [#allocation51] }
 0x10b   : > { %s2299_s26 = smov (!%p2226_p4, %s245_s26), 0  ;;  %s259_s27 = sshll.u32 %s654_s2, 4  ;;  %s1909_s27 = int_to_ptr.vmem [resolvable:$true] %s259_s27 }
 0x10c   : > { %s1902_s8 = sld [smem:[%s873_s24 + %s2299_s26]]  ;;  %s1906_s20 = scalar_lea.sflag [#allocation3], %s791_s12 }
 0x10d   : > { %s657_s4 = scalar_lea.sflag %s1906_s20, 1 [#allocation3]  ;;  %s263_s21 = sadd.s32 2, %s1860_s11 }
 0x10e   : > { %p2227_p6 = pmov %p2224_p3 }
 0x10f   : > { %s790_s15 = sshll.u32 %s228_s6, 4 }
 0x110   : > { %s230_s13 = scalar_lea.hbm %s2184_s1, %s790_s15 }
 0x111   : > { %s1185_s22 = scalar_lea.hbm %s230_s13, 16  ;;  %p1190_p9 = scmp.lt.u32.totalorder %s230_s13, %s2184_s1 }
 0x112   : > { %p1186_p1 = scmp.ne.s32.totalorder %s230_s13, %s1185_s22  ;;  %p1191_p8 = scmp.lt.u32.totalorder %s1627_s25, %s1185_s22 }
 0x113   : > { %p1193_p0 = scmp.lt.u32.totalorder %s1185_s22, %s230_s13 }
 0x114   : > { %p1187_p5 = pnand %p1186_p1, %p2227_p6  ;;  %p1192_p11 = por %p1191_p8, %p1190_p9 }
 0x116   : > { %p1188_p7 = pneg %p1187_p5  ;;  %p1194_p10 = por %p1193_p0, %p1192_p11 }
 0x118   : > { %p1195_p12 = pnand %p1194_p10, %p1188_p7 }
 0x11a   : > { %1198 = shalt.err (!%p1195_p12)  }
 0x11b   : > { %s1199_s0 = scalar_lea.vmem %s1900_s17, 16  ;;  %p1206_p1 = scmp.lt.s32.totalorder %s1900_s17, %s1637_s5 }
 0x11c   : > { %p1200_p2 = scmp.ne.s32.totalorder %s1900_s17, %s1199_s0  ;;  %p1207_p6 = scmp.lt.s32.totalorder %s1640_s7, %s1199_s0 }
 0x11e   : > { %p1201_p13 = pnand %p1200_p2, %p2224_p3  ;;  %p1208_p5 = por %p1207_p6, %p1206_p1 }
 0x120   : > { %p1202_p4 = pneg %p1201_p13 }
 0x122   : > { %p1209_p8 = pnand %p1208_p5, %p1202_p4 }
 0x124   : > { %1212 = shalt.err (!%p1209_p8)  }
 0x125   : > { %p2228_p9 = pmov %p2224_p3  ;;  %p2229_p7 = pmov %p2224_p3 }
 0x126   : > { %p2230_p11 = pmov %p2224_p3  ;;  %s792_s14 = sshll.u32 %s1902_s8, 4 }
 0x127   : > { %872 = dma.hbm_to_vmem [thread:$0]  (%p2228_p9), %s230_s13, 16, %s1900_s17, %s1906_s20 }
 0x128   : > { %s876_s22 = scalar_select %p2229_p7, [#allocation5], [#allocation52] }
 0x129   : > { %s2301_s21 = smov (!%p2230_p11, %s263_s21), 0  ;;  %s662_s12 = scalar_lea.vmem %s1891_s3, 2 [#allocation2] }
 0x12a   : > { %s248_s15 = scalar_lea.hbm %s2184_s1, %s792_s14  ;;  %s1941_s16 = sld [smem:[%s876_s22 + %s2301_s21]] }
 0x12b   : > { %s1213_s26 = scalar_lea.hbm %s248_s15, 16  ;;  %p2231_p10 = pmov %p2224_p3 }
 0x12c   : > { %p1214_p0 = scmp.ne.s32.totalorder %s248_s15, %s1213_s26  ;;  %p1218_p3 = scmp.lt.u32.totalorder %s248_s15, %s2184_s1 }
 0x12d   : > { %p1219_p13 = scmp.lt.u32.totalorder %s1627_s25, %s1213_s26  ;;  %p1221_p1 = scmp.lt.u32.totalorder %s1213_s26, %s248_s15 }
 0x12e   : > { %p1215_p12 = pnand %p1214_p0, %p2231_p10 }
 0x12f   : > { %p1220_p4 = por %p1219_p13, %p1218_p3 }
 0x130   : > { %p1216_p2 = pneg %p1215_p12 }
 0x131   : > { %p1222_p6 = por %p1221_p1, %p1220_p4 }
 0x133   : > { %p1223_p5 = pnand %p1222_p6, %p1216_p2 }
 0x135   : > { %1226 = shalt.err (!%p1223_p5)  }
 0x136   : > { %s1227_s13 = scalar_lea.vmem %s1909_s27, 16  ;;  %p2232_p9 = pmov %p2229_p7 }
 0x137   : > { %p1228_p8 = scmp.ne.s32.totalorder %s1909_s27, %s1227_s13  ;;  %p1234_p0 = scmp.lt.s32.totalorder %s1909_s27, %s1637_s5 }
 0x138   : > { %p1235_p10 = scmp.lt.s32.totalorder %s1640_s7, %s1227_s13 }
 0x139   : > { %p1229_p7 = pnand %p1228_p8, %p2232_p9 }
 0x13a   : > { %p1236_p12 = por %p1235_p10, %p1234_p0 }
 0x13b   : > { %p1230_p11 = pneg %p1229_p7 }
 0x13d   : > { %p1237_p3 = pnand %p1236_p12, %p1230_p11 }
 0x13f   : > { %1240 = shalt.err (!%p1237_p3)  }
 0x140   : > { %p2233_p13 = pmov %p2232_p9  ;;  %s277_s21 = sshll.u32 %s662_s12, 4  ;;  %s278_s21 = int_to_ptr.vmem [resolvable:$true] %s277_s21 }
 0x141   : > { %s281_s17 = sadd.s32 3, %s1860_s11  ;;  %s665_s8 = scalar_lea.sflag %s1906_s20, 2 [#allocation3] }
 0x142   : > { %875 = dma.hbm_to_vmem [thread:$0]  (%p2233_p13), %s248_s15, 16, %s1909_s27, %s657_s4 }
 0x143   : > { %p2234_p2 = pmov %p2232_p9  ;;  %s795_s14 = sshll.u32 %s1941_s16, 4 }
 0x144   : > { %s670_s6 = scalar_lea.vmem %s1891_s3, 3 [#allocation2]  ;;  %s266_s2 = scalar_lea.hbm %s2184_s1, %s795_s14 }
 0x145   : > { %s879_s22 = scalar_select %p2234_p2, [#allocation5], [#allocation53] }
 0x146   : > { %p2235_p4 = pmov %p2234_p2  ;;  %s1241_s13 = scalar_lea.hbm %s266_s2, 16 }
 0x147   : > { %p1242_p1 = scmp.ne.s32.totalorder %s266_s2, %s1241_s13  ;;  %p2236_p6 = pmov %p2234_p2 }
 0x148   : > { %s2303_s17 = smov (!%p2235_p4, %s281_s17), 0  ;;  %p1246_p9 = scmp.lt.u32.totalorder %s266_s2, %s2184_s1 }
 0x149   : > { %s1972_s0 = sld [smem:[%s879_s22 + %s2303_s17]]  ;;  %p1243_p5 = pnand %p1242_p1, %p2236_p6 }
 0x14a   : > { %p1247_p7 = scmp.lt.u32.totalorder %s1627_s25, %s1241_s13  ;;  %p1249_p0 = scmp.lt.u32.totalorder %s1241_s13, %s266_s2 }
 0x14b   : > { %p1244_p8 = pneg %p1243_p5 }
 0x14c   : > { %p1248_p11 = por %p1247_p7, %p1246_p9 }
 0x14e   : > { %p1250_p10 = por %p1249_p0, %p1248_p11 }
 0x150   : > { %p1251_p12 = pnand %p1250_p10, %p1244_p8 }
 0x152   : > { %1254 = shalt.err (!%p1251_p12)  }
 0x153   : > { %s1255_s12 = scalar_lea.vmem %s278_s21, 16  ;;  %p2237_p13 = pmov %p2234_p2 }
 0x154   : > { %p1256_p3 = scmp.ne.s32.totalorder %s278_s21, %s1255_s12  ;;  %p1262_p1 = scmp.lt.s32.totalorder %s278_s21, %s1637_s5 }
 0x155   : > { %p1263_p6 = scmp.lt.s32.totalorder %s1640_s7, %s1255_s12 }
 0x156   : > { %p1257_p2 = pnand %p1256_p3, %p2237_p13 }
 0x157   : > { %p1264_p5 = por %p1263_p6, %p1262_p1 }
 0x158   : > { %p1258_p4 = pneg %p1257_p2 }
 0x15a   : > { %p1265_p7 = pnand %p1264_p5, %p1258_p4 }
 0x15c   : > { %1268 = shalt.err (!%p1265_p7)  }
 0x15d   : > { %p2238_p9 = pmov %p2237_p13  ;;  %s295_s15 = sshll.u32 %s670_s6, 4  ;;  %s296_s15 = int_to_ptr.vmem [resolvable:$true] %s295_s15 }
 0x15e   : > { %s299_s16 = sadd.s32 4, %s1860_s11  ;;  %s673_s17 = scalar_lea.sflag %s1906_s20, 3 [#allocation3] }
 0x15f   : > { %878 = dma.hbm_to_vmem [thread:$0]  (%p2238_p9), %s266_s2, 16, %s278_s21, %s665_s8 }
 0x160   : > { %p2239_p8 = pmov %p2238_p9  ;;  %s798_s14 = sshll.u32 %s1972_s0, 4 }
 0x161   : > { %s678_s24 = scalar_lea.vmem %s1891_s3, 4 [#allocation2]  ;;  %s284_s27 = scalar_lea.hbm %s2184_s1, %s798_s14 }
 0x162   : > { %s882_s22 = scalar_select %p2239_p8, [#allocation5], [#allocation54] }
 0x163   : > { %p2240_p11 = pmov %p2239_p8  ;;  %s1269_s12 = scalar_lea.hbm %s284_s27, 16 }
 0x164   : > { %p1270_p0 = scmp.ne.s32.totalorder %s284_s27, %s1269_s12  ;;  %p2241_p10 = pmov %p2239_p8 }
 0x165   : > { %s2305_s16 = smov (!%p2240_p11, %s299_s16), 0  ;;  %p1274_p13 = scmp.lt.u32.totalorder %s284_s27, %s2184_s1 }
 0x166   : > { %s1999_s4 = sld [smem:[%s882_s22 + %s2305_s16]]  ;;  %p1271_p12 = pnand %p1270_p0, %p2241_p10 }
 0x167   : > { %p1275_p2 = scmp.lt.u32.totalorder %s1627_s25, %s1269_s12  ;;  %p1277_p1 = scmp.lt.u32.totalorder %s1269_s12, %s284_s27 }
 0x168   : > { %p1272_p3 = pneg %p1271_p12 }
 0x169   : > { %p1276_p4 = por %p1275_p2, %p1274_p13 }
 0x16b   : > { %p1278_p6 = por %p1277_p1, %p1276_p4 }
 0x16d   : > { %p1279_p5 = pnand %p1278_p6, %p1272_p3 }
 0x16f   : > { %1282 = shalt.err (!%p1279_p5)  }
 0x170   : > { %s1283_s6 = scalar_lea.vmem %s296_s15, 16  ;;  %p2242_p9 = pmov %p2239_p8 }
 0x171   : > { %p1284_p7 = scmp.ne.s32.totalorder %s296_s15, %s1283_s6  ;;  %p1290_p0 = scmp.lt.s32.totalorder %s296_s15, %s1637_s5 }
 0x172   : > { %p1291_p10 = scmp.lt.s32.totalorder %s1640_s7, %s1283_s6 }
 0x173   : > { %p1285_p8 = pnand %p1284_p7, %p2242_p9 }
 0x174   : > { %p1292_p12 = por %p1291_p10, %p1290_p0 }
 0x175   : > { %p1286_p11 = pneg %p1285_p8 }
 0x177   : > { %p1293_p2 = pnand %p1292_p12, %p1286_p11 }
 0x179   : > { %1296 = shalt.err (!%p1293_p2)  }
 0x17a   : > { %p2243_p13 = pmov %p2242_p9  ;;  %s313_s2 = sshll.u32 %s678_s24, 4  ;;  %s314_s2 = int_to_ptr.vmem [resolvable:$true] %s313_s2 }
 0x17b   : > { %s317_s0 = sadd.s32 5, %s1860_s11  ;;  %s681_s16 = scalar_lea.sflag %s1906_s20, 4 [#allocation3] }
 0x17c   : > { %881 = dma.hbm_to_vmem [thread:$0]  (%p2243_p13), %s284_s27, 16, %s296_s15, %s673_s17 }
 0x17d   : > { %p2244_p3 = pmov %p2242_p9  ;;  %s801_s14 = sshll.u32 %s1999_s4, 4 }
 0x17e   : > { %s686_s26 = scalar_lea.vmem %s1891_s3, 5 [#allocation2]  ;;  %s302_s21 = scalar_lea.hbm %s2184_s1, %s801_s14 }
 0x17f   : > { %s885_s22 = scalar_select %p2244_p3, [#allocation5], [#allocation55] }
 0x180   : > { %p2245_p4 = pmov %p2244_p3  ;;  %s1297_s6 = scalar_lea.hbm %s302_s21, 16 }
 0x181   : > { %p1298_p1 = scmp.ne.s32.totalorder %s302_s21, %s1297_s6  ;;  %p2246_p6 = pmov %p2244_p3 }
 0x182   : > { %s2307_s0 = smov (!%p2245_p4, %s317_s0), 0  ;;  %p1302_p9 = scmp.lt.u32.totalorder %s302_s21, %s2184_s1 }
 0x183   : > { %s2026_s8 = sld [smem:[%s885_s22 + %s2307_s0]]  ;;  %p1299_p5 = pnand %p1298_p1, %p2246_p6 }
 0x184   : > { %p1303_p8 = scmp.lt.u32.totalorder %s1627_s25, %s1297_s6  ;;  %p1305_p0 = scmp.lt.u32.totalorder %s1297_s6, %s302_s21 }
 0x185   : > { %p1300_p7 = pneg %p1299_p5 }
 0x186   : > { %p1304_p11 = por %p1303_p8, %p1302_p9 }
 0x188   : > { %p1306_p10 = por %p1305_p0, %p1304_p11 }
 0x18a   : > { %p1307_p12 = pnand %p1306_p10, %p1300_p7 }
 0x18c   : > { %1310 = shalt.err (!%p1307_p12)  }
 0x18d   : > { %s1311_s24 = scalar_lea.vmem %s314_s2, 16  ;;  %p2247_p13 = pmov %p2244_p3 }
 0x18e   : > { %p1312_p2 = scmp.ne.s32.totalorder %s314_s2, %s1311_s24  ;;  %p1318_p1 = scmp.lt.s32.totalorder %s314_s2, %s1637_s5 }
 0x18f   : > { %p1319_p6 = scmp.lt.s32.totalorder %s1640_s7, %s1311_s24 }
 0x190   : > { %p1313_p3 = pnand %p1312_p2, %p2247_p13 }
 0x191   : > { %p1320_p5 = por %p1319_p6, %p1318_p1 }
 0x192   : > { %p1314_p4 = pneg %p1313_p3 }
 0x194   : > { %p1321_p8 = pnand %p1320_p5, %p1314_p4 }
 0x196   : > { %1324 = shalt.err (!%p1321_p8)  }
 0x197   : > { %p2248_p9 = pmov %p2247_p13  ;;  %s331_s27 = sshll.u32 %s686_s26, 4  ;;  %s332_s27 = int_to_ptr.vmem [resolvable:$true] %s331_s27 }
 0x198   : > { %s335_s4 = sadd.s32 6, %s1860_s11  ;;  %s689_s0 = scalar_lea.sflag %s1906_s20, 5 [#allocation3] }
 0x199   : > { %884 = dma.hbm_to_vmem [thread:$0]  (%p2248_p9), %s302_s21, 16, %s314_s2, %s681_s16 }
 0x19a   : > { %p2249_p7 = pmov %p2248_p9  ;;  %s804_s14 = sshll.u32 %s2026_s8, 4 }
 0x19b   : > { %s694_s13 = scalar_lea.vmem %s1891_s3, 6 [#allocation2]  ;;  %s320_s15 = scalar_lea.hbm %s2184_s1, %s804_s14 }
 0x19c   : > { %s888_s22 = scalar_select %p2249_p7, [#allocation5], [#allocation56] }
 0x19d   : > { %p2250_p11 = pmov %p2249_p7  ;;  %s1325_s24 = scalar_lea.hbm %s320_s15, 16 }
 0x19e   : > { %p1326_p0 = scmp.ne.s32.totalorder %s320_s15, %s1325_s24  ;;  %p2251_p10 = pmov %p2249_p7 }
 0x19f   : > { %s2309_s4 = smov (!%p2250_p11, %s335_s4), 0  ;;  %p1330_p13 = scmp.lt.u32.totalorder %s320_s15, %s2184_s1 }
 0x1a0   : > { %s2053_s17 = sld [smem:[%s888_s22 + %s2309_s4]]  ;;  %p1327_p12 = pnand %p1326_p0, %p2251_p10 }
 0x1a1   : > { %p1331_p3 = scmp.lt.u32.totalorder %s1627_s25, %s1325_s24  ;;  %p1333_p1 = scmp.lt.u32.totalorder %s1325_s24, %s320_s15 }
 0x1a2   : > { %p1328_p2 = pneg %p1327_p12 }
 0x1a3   : > { %p1332_p4 = por %p1331_p3, %p1330_p13 }
 0x1a5   : > { %p1334_p6 = por %p1333_p1, %p1332_p4 }
 0x1a7   : > { %p1335_p5 = pnand %p1334_p6, %p1328_p2 }
 0x1a9   : > { %1338 = shalt.err (!%p1335_p5)  }
 0x1aa   : > { %s1339_s26 = scalar_lea.vmem %s332_s27, 16  ;;  %p2252_p9 = pmov %p2249_p7 }
 0x1ab   : > { %p1340_p8 = scmp.ne.s32.totalorder %s332_s27, %s1339_s26  ;;  %p1346_p0 = scmp.lt.s32.totalorder %s332_s27, %s1637_s5 }
 0x1ac   : > { %p1347_p10 = scmp.lt.s32.totalorder %s1640_s7, %s1339_s26 }
 0x1ad   : > { %p1341_p7 = pnand %p1340_p8, %p2252_p9 }
 0x1ae   : > { %p1348_p12 = por %p1347_p10, %p1346_p0 }
 0x1af   : > { %p1342_p11 = pneg %p1341_p7 }
 0x1b1   : > { %p1349_p3 = pnand %p1348_p12, %p1342_p11 }
 0x1b3   : > { %1352 = shalt.err (!%p1349_p3)  }
 0x1b4   : > { %p2253_p13 = pmov %p2252_p9  ;;  %s349_s21 = sshll.u32 %s694_s13, 4  ;;  %s350_s21 = int_to_ptr.vmem [resolvable:$true] %s349_s21 }
 0x1b5   : > { %s353_s8 = sadd.s32 7, %s1860_s11  ;;  %s697_s4 = scalar_lea.sflag %s1906_s20, 6 [#allocation3] }
 0x1b6   : > { %887 = dma.hbm_to_vmem [thread:$0]  (%p2253_p13), %s320_s15, 16, %s332_s27, %s689_s0 }
 0x1b7   : > { %p2254_p2 = pmov %p2252_p9  ;;  %s807_s14 = sshll.u32 %s2053_s17, 4 }
 0x1b8   : > { %s702_s12 = scalar_lea.vmem %s1891_s3, 7 [#allocation2]  ;;  %s338_s2 = scalar_lea.hbm %s2184_s1, %s807_s14 }
 0x1b9   : > { %s891_s22 = scalar_select %p2254_p2, [#allocation5], [#allocation57] }
 0x1ba   : > { %p2255_p4 = pmov %p2254_p2  ;;  %s1353_s26 = scalar_lea.hbm %s338_s2, 16 }
 0x1bb   : > { %p1354_p1 = scmp.ne.s32.totalorder %s338_s2, %s1353_s26  ;;  %p2256_p6 = pmov %p2254_p2 }
 0x1bc   : > { %s2311_s8 = smov (!%p2255_p4, %s353_s8), 0  ;;  %p1358_p9 = scmp.lt.u32.totalorder %s338_s2, %s2184_s1 }
 0x1bd   : > { %s354_s16 = sld [smem:[%s891_s22 + %s2311_s8]]  ;;  %p1355_p5 = pnand %p1354_p1, %p2256_p6 }
 0x1be   : > { %p1359_p7 = scmp.lt.u32.totalorder %s1627_s25, %s1353_s26  ;;  %p1361_p0 = scmp.lt.u32.totalorder %s1353_s26, %s338_s2 }
 0x1bf   : > { %p1356_p8 = pneg %p1355_p5 }
 0x1c0   : > { %p1360_p11 = por %p1359_p7, %p1358_p9 }
 0x1c2   : > { %p1362_p10 = por %p1361_p0, %p1360_p11 }
 0x1c4   : > { %p1363_p12 = pnand %p1362_p10, %p1356_p8 }
 0x1c6   : > { %1366 = shalt.err (!%p1363_p12)  }
 0x1c7   : > { %s1367_s3 = scalar_lea.vmem %s350_s21, 16  ;;  %p2257_p13 = pmov %p2254_p2 }
 0x1c8   : > { %p1368_p3 = scmp.ne.s32.totalorder %s350_s21, %s1367_s3  ;;  %p1374_p1 = scmp.lt.s32.totalorder %s350_s21, %s1637_s5 }
 0x1c9   : > { %p1375_p6 = scmp.lt.s32.totalorder %s1640_s7, %s1367_s3 }
 0x1ca   : > { %p1369_p2 = pnand %p1368_p3, %p2257_p13 }
 0x1cb   : > { %p1376_p5 = por %p1375_p6, %p1374_p1 }
 0x1cc   : > { %p1370_p4 = pneg %p1369_p2 }
 0x1ce   : > { %p1377_p7 = pnand %p1376_p5, %p1370_p4 }
 0x1d0   : > { %1380 = shalt.err (!%p1377_p7)  }
 0x1d1   : > { %p2258_p9 = pmov %p2257_p13  ;;  %s367_s0 = sshll.u32 %s702_s12, 4  ;;  %s368_s0 = int_to_ptr.vmem [resolvable:$true] %s367_s0 }
 0x1d2   : > { %s705_s13 = scalar_lea.sflag %s1906_s20, 7 [#allocation3]  ;;  %s810_s15 = sshll.u32 %s354_s16, 4 }
 0x1d3   : > { %890 = dma.hbm_to_vmem [thread:$0]  (%p2258_p9), %s338_s2, 16, %s350_s21, %s697_s4 }
 0x1d4   : > { %s356_s22 = scalar_lea.hbm %s2184_s1, %s810_s15  ;;  %p2259_p11 = pmov %p2258_p9 }
 0x1d5   : > { %s1381_s14 = scalar_lea.hbm %s356_s22, 16  ;;  %p1386_p12 = scmp.lt.u32.totalorder %s356_s22, %s2184_s1 }
 0x1d6   : > { %p1382_p8 = scmp.ne.s32.totalorder %s356_s22, %s1381_s14  ;;  %p1387_p3 = scmp.lt.u32.totalorder %s1627_s25, %s1381_s14 }
 0x1d7   : > { %p1389_p2 = scmp.lt.u32.totalorder %s1381_s14, %s356_s22 }
 0x1d8   : > { %p1383_p0 = pnand %p1382_p8, %p2259_p11  ;;  %p1388_p13 = por %p1387_p3, %p1386_p12 }
 0x1da   : > { %p1384_p10 = pneg %p1383_p0  ;;  %p1390_p4 = por %p1389_p2, %p1388_p13 }
 0x1dc   : > { %p1391_p1 = pnand %p1390_p4, %p1384_p10 }
 0x1de   : > { %1394 = shalt.err (!%p1391_p1)  }
 0x1df   : > { %s1395_s20 = scalar_lea.vmem %s368_s0, 16  ;;  %p2260_p5 = pmov %p2258_p9 }
 0x1e0   : > { %p1396_p6 = scmp.ne.s32.totalorder %s368_s0, %s1395_s20  ;;  %p1402_p8 = scmp.lt.s32.totalorder %s368_s0, %s1637_s5 }
 0x1e1   : > { %p1403_p11 = scmp.lt.s32.totalorder %s1640_s7, %s1395_s20 }
 0x1e2   : > { %p1397_p7 = pnand %p1396_p6, %p2260_p5 }
 0x1e3   : > { %p1404_p0 = por %p1403_p11, %p1402_p8 }
 0x1e4   : > { %p1398_p9 = pneg %p1397_p7 }
 0x1e6   : > { %p1405_p3 = pnand %p1404_p0, %p1398_p9 }
 0x1e8   : > { %1408 = shalt.err (!%p1405_p3)  }
 0x1e9   : > { %p2261_p12 = pmov %p2260_p5  ;;  %s63_s25 = scalar_lea.vmem [#allocation6], %s1580_s29 }
 0x1eb   : > { %893 = dma.hbm_to_vmem [thread:$0]  (%p2261_p12), %s356_s22, 16, %s368_s0, %s705_s13 }
 0x1ec   : > { %1459 = dma.done.wait %s1610_s28, 16 }
 0x1ed   : > { %1460 = vsyncadd %s1610_s28, 4294967280 }
 0x1ee   : > { %1461 = dma.done.wait %s1613_s30, 16 }
 0x1ef   : > { %1462 = vsyncadd %s1613_s30, 4294967280 }
 0x1f0   : > { %1463 = dma.done.wait %s1657_s10, 16 }
 0x1f1   : > { %1464 = vsyncadd %s1657_s10, 4294967280 }
 0x1f2   : > { %1465 = dma.done.wait %s1714_s9, 16 }
 0x1f3   : > { %1466 = vsyncadd %s1714_s9, 4294967280 }
 0x1f4   : > { %1467 = dma.done.wait %s1748_s19, 16 }
 0x1f5   : > { %1468 = vsyncadd %s1748_s19, 4294967280 }
 0x1f6   : > { %1469 = dma.done.wait %s1782_s23, 16 }
 0x1f7   : > { %1470 = vsyncadd %s1782_s23, 4294967280  ;;  %s2262_s18 = sld [smem:[#allocation79_spill]] }
 0x1fd   : > { %1471 = dma.done.wait %s2262_s18, 16 }
 0x1fe   : > { %1472 = vsyncadd %s2262_s18, 4294967280  ;;  %s2263_s28 = sld [smem:[#allocation80_spill]] }
 0x204   : > { %1473 = dma.done.wait %s2263_s28, 16 }
 0x205   : > { %1474 = vsyncadd %s2263_s28, 4294967280  ;;  %s2264_s30 = sld [smem:[#allocation78_spill]]  ;;  %v1501_v3 = vmov 0.0   ;;  %s2265_s5 = sld [smem:[#allocation71_spill]] }
 0x206   : > { %s2266_s7 = sld [smem:[#allocation70_spill]]  ;;  %s2267_s10 = sld [smem:[#allocation69_spill]] }
 0x207   : > { %s2268_s9 = sld [smem:[#allocation77_spill]]  ;;  %s447_s23 = sshll.u32 %s63_s25, 4  ;;  %s2139_s23 = int_to_ptr.vmem [resolvable:$true] %s447_s23 }
 0x208   : > { %s2269_s2 = sld [smem:[#allocation81_spill]]  ;;  %s1409_s11 = scalar_lea.vmem %s2139_s23, 128 }
 0x209   : > { %p1410_p10 = scmp.ne.s32.totalorder %s2139_s23, %s1409_s11  ;;  %s1502_s29 = smov [#allocation6]  }
 0x20a   : > { %s1413_s3 = sshll.u32 %s1502_s29, 4  ;;  %s1414_s3 = int_to_ptr.vmem [resolvable:$false] %s1413_s3 }
 0x20b   : > { %v405_v0 = vld [vmem:[%s2264_s30] sm:$0xff]  ;;  %s823_s19 = sshll.u32 %s2265_s5, 7  ;;  %s1415_s0 = scalar_lea.vmem %s1414_s3, 256 }
 0x20c   : > { %v406_v1 = vmul.f32 %v405_v0, %v405_v0  ;;  %s431_s21 = scalar_lea.vmem %s63_s25, %s2266_s7 [#allocation6]  ;;  %s2270_s26 = sand.u32 1, %s2267_s10  }
 0x20d   : > { %s434_s27 = scalar_lea.sflag [#allocation7], %s2270_s26  ;;  %p2271_p13 = scmp.ne.s32.totalorder %s2268_s9, 0 }
 0x20e   : > { %407 = vadd.xlane.f32.xlu0 %v406_v1  ;;  %s2137_s16 = scalar_lea.hbm %s2269_s2, %s823_s19  ;;  %p1416_p1 = scmp.lt.s32.totalorder %s2139_s23, %s1414_s3 }
 0x20f   : > { %p1411_p2 = pnand %p1410_p10, %p2271_p13  ;;  %p1417_p6 = scmp.lt.s32.totalorder %s1415_s0, %s1409_s11 }
 0x211   : > { %p1412_p4 = pneg %p1411_p2  ;;  %p1418_p5 = por %p1417_p6, %p1416_p1 }
 0x213   : > { %p1419_p7 = pnand %p1418_p5, %p1412_p4 }
 0x29b   : > { %v408_v2 = vpop.xlane.xlu0 %407 }
 0x29c   : > { %vm409_vm0 = vcmp.gt.f32.partialorder %v408_v2, 0.0  ;;  %945 = vrsqrt.f32 %v408_v2 }
 0x29d   : > { %v821_v4 = vsel %vm409_vm0, 1.0, %v1501_v3 }
 0x29e   : > { %v421_v5 = vrot.slane %v821_v4, 4 }
 0x2a0   : > { %v422_v6 = vadd.f32 %v821_v4, %v421_v5 }
 0x2a2   : > { %v423_v7 = vrot.slane %v422_v6, 2 }
 0x2a4   : > { %v424_v8 = vadd.f32 %v423_v7, %v422_v6 }
 0x2a6   : > { %v946_v9 = vpop.eup %945  ;;  %v425_v10 = vrot.slane %v424_v8, 1 }
 0x2a7   : > { %v411_v11 = vsel %vm409_vm0, %v946_v9, 0.0 }
 0x2a8   : > { %v412_v12 = vmul.f32 %v411_v11, %v405_v0  ;;  %v426_v13 = vadd.f32 %v425_v10, %v424_v8 }
 0x2aa   : > { %v413_v14 = vrot.slane %v412_v12, 4  ;;  %vm427_vm1 = vcmp.gt.f32.partialorder %v426_v13, 0.0 }
 0x2ab   : > { %v428_v15 = vsel %vm427_vm1, %v426_v13, 1.0 }
 0x2ac   : > { %v414_v16 = vadd.f32 %v413_v14, %v412_v12  ;;  %947 = vrcp.f32 %v428_v15 }
 0x2ae   : > { %v415_v17 = vrot.slane %v414_v16, 2 }
 0x2b0   : > { %v416_v18 = vadd.f32 %v415_v17, %v414_v16 }
 0x2b2   : > { %v417_v19 = vrot.slane %v416_v18, 1 }
 0x2b4   : > { %v418_v20 = vadd.f32 %v417_v19, %v416_v18 }
 0x2b6   : > { %v948_v21 = vpop.eup %947 }
 0x2b7   : > { %v430_v22 = vmul.f32 %v948_v21, %v418_v20 }
 0x2b9   : > { %432 = vst [vmem:[%s431_s21] sm:$0x1] %v430_v22 }
 0x2ba   : > { %1422 = shalt.err (!%p1419_p7)
}
 0x2bb   : > { %s1423_s13 = scalar_lea.hbm %s2137_s16, 128  ;;  %s1427_s8 = scalar_lea.hbm %s2269_s2, 256 }
 0x2bc   : > { %p1424_p9 = scmp.ne.s32.totalorder %s2137_s16, %s1423_s13  ;;  %p1428_p0 = scmp.lt.u32.totalorder %s2137_s16, %s2269_s2 }
 0x2bd   : > { %p1429_p3 = scmp.lt.u32.totalorder %s1427_s8, %s1423_s13  ;;  %p1431_p10 = scmp.lt.u32.totalorder %s1423_s13, %s2137_s16 }
 0x2be   : > { %p1425_p8 = pnand %p1424_p9, %p2271_p13 }
 0x2bf   : > { %p1430_p12 = por %p1429_p3, %p1428_p0 }
 0x2c0   : > { %p1426_p11 = pneg %p1425_p8 }
 0x2c1   : > { %p1432_p2 = por %p1431_p10, %p1430_p12 }
 0x2c3   : > { %p1433_p4 = pnand %p1432_p2, %p1426_p11 }
 0x2c5   : > { %1436 = shalt.err (!%p1433_p4)
}
 0x2c6   : > { %894 = dma.vmem_to_hbm [thread:$0]  (%p2271_p13), %s2139_s23, 128, %s2137_s16, %s434_s27  }
 0x2c7 PF: > { %s2272_s6 = sld [smem:[#allocation72_spill]]  ;;  %s2273_s24 = sld [smem:[#allocation68_spill]] }
 0x2c8   : > { %s2274_s20 = sld [smem:[#allocation74_spill]] }
 0x2cd   : > { %p902_p1 = scmp.ge.s32.totalorder %s2272_s6, 1  ;;  %s459_s25 = sand.u32 1, %s2273_s24  }
 0x2ce   : > { %p2275_p6 = scmp.ne.s32.totalorder %s2274_s20, 0  ;;  %s460_s18 = scalar_lea.sflag [#allocation7], %s459_s25 }
 0x2d0   : > { %p897_p5 = pnand %p902_p1, %p2275_p6 }
 0x2d2   : > { %1476 = dma.done.wait (!%p897_p5), %s460_s18, 128  }
 0x2d3   : > { %1478 = vsyncadd (!%p897_p5), %s460_s18, 4294967168  ;;  %s21_s17 = sadd.s32 1, %s2272_s6   ;;  %s2276_s14 = sld [smem:[#allocation69_spill]] }
 0x2d4   : > { %p18_p7 = scmp.ge.s32.totalorder %s21_s17, 17   ;;  %s2277_s15 = sld [smem:[#allocation76_spill]] }
 0x2d5   : > { %s2278_s0 = sld [smem:[#allocation73_spill]]  ;;  %s2279_s16 = sld [smem:[#allocation75_spill]] }
 0x2d6   :  { %20 = sbr.rel (!%p18_p7) target bundleno = 19 (0x13), region = 189 }
 0x2dd   :  { %465 = vsyncpa [#allocation7], 1 }
 0x2de   :  { %467 = vsyncpa [#allocation7 + $0x1], 1 }
 0x2df   :  { %468 = vsyncmov [#allocation3] }
 0x2e2   :  { %s469_s28 = vpop.sfrf %468 }
 0x2e3   :  { %p826_p13 = scmp.ne.s32.totalorder %s469_s28, 0 }
 0x2e5   :  { %473 = shalt.err (%p826_p13)  }
 0x2e6   :  { %475 = vsyncmov [#allocation3 + $0x1] }
 0x2e9   :  { %s476_s30 = vpop.sfrf %475 }
 0x2ea   :  { %p827_p9 = scmp.ne.s32.totalorder %s476_s30, 0 }
 0x2ec   :  { %480 = shalt.err (%p827_p9)  }
 0x2ed   :  { %482 = vsyncmov [#allocation3 + $0x2] }
 0x2f0   :  { %s483_s5 = vpop.sfrf %482 }
 0x2f1   :  { %p828_p8 = scmp.ne.s32.totalorder %s483_s5, 0 }
 0x2f3   :  { %487 = shalt.err (%p828_p8)  }
 0x2f4   :  { %489 = vsyncmov [#allocation3 + $0x3] }
 0x2f7   :  { %s490_s7 = vpop.sfrf %489 }
 0x2f8   :  { %p829_p11 = scmp.ne.s32.totalorder %s490_s7, 0 }
 0x2fa   :  { %494 = shalt.err (%p829_p11)  }
 0x2fb   :  { %496 = vsyncmov [#allocation3 + $0x4] }
 0x2fe   :  { %s497_s10 = vpop.sfrf %496 }
 0x2ff   :  { %p830_p0 = scmp.ne.s32.totalorder %s497_s10, 0 }
 0x301   :  { %501 = shalt.err (%p830_p0)  }
 0x302   :  { %503 = vsyncmov [#allocation3 + $0x5] }
 0x305   :  { %s504_s1 = vpop.sfrf %503 }
 0x306   :  { %p831_p3 = scmp.ne.s32.totalorder %s504_s1, 0 }
 0x308   :  { %508 = shalt.err (%p831_p3)  }
 0x309   :  { %510 = vsyncmov [#allocation3 + $0x6] }
 0x30c   :  { %s511_s9 = vpop.sfrf %510 }
 0x30d   :  { %p832_p12 = scmp.ne.s32.totalorder %s511_s9, 0 }
 0x30f   :  { %515 = shalt.err (%p832_p12)  }
 0x310   :  { %517 = vsyncmov [#allocation3 + $0x7] }
 0x313   :  { %s518_s19 = vpop.sfrf %517 }
 0x314   :  { %p833_p10 = scmp.ne.s32.totalorder %s518_s19, 0 }
 0x316   :  { %522 = shalt.err (%p833_p10)  }
 0x317   :  { %524 = vsyncmov [#allocation3 + $0x8] }
 0x31a   :  { %s525_s23 = vpop.sfrf %524 }
 0x31b   :  { %p834_p2 = scmp.ne.s32.totalorder %s525_s23, 0 }
 0x31d   :  { %529 = shalt.err (%p834_p2)  }
 0x31e   :  { %531 = vsyncmov [#allocation3 + $0x9] }
 0x321   :  { %s532_s21 = vpop.sfrf %531 }
 0x322   :  { %p835_p4 = scmp.ne.s32.totalorder %s532_s21, 0 }
 0x324   :  { %536 = shalt.err (%p835_p4)  }
 0x325   :  { %538 = vsyncmov [#allocation3 + $0xa] }
 0x328   :  { %s539_s4 = vpop.sfrf %538 }
 0x329   :  { %p836_p1 = scmp.ne.s32.totalorder %s539_s4, 0 }
 0x32b   :  { %543 = shalt.err (%p836_p1)  }
 0x32c   :  { %545 = vsyncmov [#allocation3 + $0xb] }
 0x32f   :  { %s546_s12 = vpop.sfrf %545 }
 0x330   :  { %p837_p6 = scmp.ne.s32.totalorder %s546_s12, 0 }
 0x332   :  { %550 = shalt.err (%p837_p6)  }
 0x333   :  { %552 = vsyncmov [#allocation3 + $0xc] }
 0x336   :  { %s553_s2 = vpop.sfrf %552 }
 0x337   :  { %p838_p5 = scmp.ne.s32.totalorder %s553_s2, 0 }
 0x339   :  { %557 = shalt.err (%p838_p5)  }
 0x33a   :  { %559 = vsyncmov [#allocation3 + $0xd] }
 0x33d   :  { %s560_s16 = vpop.sfrf %559 }
 0x33e   :  { %p839_p7 = scmp.ne.s32.totalorder %s560_s16, 0 }
 0x340   :  { %564 = shalt.err (%p839_p7)  }
 0x341   :  { %566 = vsyncmov [#allocation3 + $0xe] }
 0x344   :  { %s567_s26 = vpop.sfrf %566 }
 0x345   :  { %p840_p13 = scmp.ne.s32.totalorder %s567_s26, 0 }
 0x347   :  { %571 = shalt.err (%p840_p13)  }
 0x348   :  { %573 = vsyncmov [#allocation3 + $0xf] }
 0x34b   :  { %s574_s27 = vpop.sfrf %573 }
 0x34c   :  { %p841_p9 = scmp.ne.s32.totalorder %s574_s27, 0 }
 0x34e   :  { %578 = shalt.err (%p841_p9)  }

</bundles_post_ra>
